<compile_context>
chip_gen: v7x
topology: tpu7x:2x2x1
jax: 0.10.0
libtpu: 0.0.40
codegen_flags: <defaults>
</compile_context>

<pallas_src>
import math

import jax
import jax.numpy as jnp
from jax.experimental import pallas as pl
from jax.experimental.pallas import tpu as pltpu

BBOX_XFORM_CLIP = math.log(1000.0 / 16.0)


def _vmem_cap_bytes():
    try:
        return int(pltpu.get_tpu_info().vmem_capacity_bytes)
    except Exception:
        return 64 * 2 ** 20  # conservative: v7x per-TensorCore VMEM


# ----------------------------------------------------------------------------
# Fused Pallas kernel: conv3x3 + ReLU + (cls|bbox) 1x1 convs + BoxCoder.decode
# ----------------------------------------------------------------------------
def _make_fused_kernel(A, C, W, TILE_H):
    T = TILE_H * W  # rows handled per grid step

    def kernel(x_ref, anch_ref, w3_ref, b1_ref, wh_ref, bh_ref, out_ref):
        # x_ref   : (H+2, W+2, C)  halo-padded NHWC image (bf16, whole image)
        # anch_ref: (H*W, 4A)      anchor centers [acx|acy|aw|ah] (f32, resident)
        # w3_ref  : (3, 3C, C)     conv taps packed per ky (kx-major rows), bf16
        # wh_ref  : (C, HEAD_W)    fused head weight [cls|dx|dy|dw|dh|pad], bf16
        # out_ref : (T, 5A)        [cls | x1 | y1 | x2 | y2] (groups of A), f32
        t = pl.program_id(1)
        row0 = t * TILE_H

        # --- 3x3 conv (padding=1) as 3 accumulated MXU matmuls, K = 3C ---
        tile = x_ref[pl.ds(row0, TILE_H + 2), :, :]          # one hoisted load
        acc = jnp.zeros((T, C), jnp.float32)
        for ky in range(3):
            slab = tile[ky:ky + TILE_H]                      # (TILE_H, W+2, C)
            xs3 = jnp.concatenate(
                [slab[:, 0:W, :], slab[:, 1:W + 1, :], slab[:, 2:W + 2, :]],
                axis=-1).reshape(T, 3 * C)                   # (T, 3C)
            acc = acc + jnp.dot(xs3, w3_ref[ky],
                                preferred_element_type=jnp.float32)
        hidden = jnp.maximum(acc + b1_ref[...], 0.0)         # ReLU in f32

        # --- fused cls + bbox heads: single lane-padded bf16 matmul ---
        head = jnp.dot(hidden.astype(wh_ref.dtype), wh_ref[...],
                       preferred_element_type=jnp.float32) + bh_ref[...]
        cls = head[:, 0:A]
        dx = head[:, A:2 * A]
        dy = head[:, 2 * A:3 * A]
        dw = head[:, 3 * A:4 * A]
        dh = head[:, 4 * A:5 * A]

        # --- BoxCoder.decode, weights = (1, 1, 1, 1); anchors pre-centered ---
        arow = pl.multiple_of(t * T, 8)
        anc = anch_ref[pl.ds(arow, T), :]
        acx = anc[:, 0:A]
        acy = anc[:, A:2 * A]
        aw = anc[:, 2 * A:3 * A]
        ah = anc[:, 3 * A:4 * A]
        pcx = dx * aw + acx
        pcy = dy * ah + acy
        pw = jnp.exp(jnp.minimum(dw, BBOX_XFORM_CLIP)) * aw
        ph = jnp.exp(jnp.minimum(dh, BBOX_XFORM_CLIP)) * ah

        # Write the 5 groups directly into lane slices (no concatenate).
        out_ref[:, 0:A] = cls
        out_ref[:, A:2 * A] = pcx - 0.5 * pw
        out_ref[:, 2 * A:3 * A] = pcy - 0.5 * ph
        out_ref[:, 3 * A:4 * A] = pcx + 0.5 * pw
        out_ref[:, 4 * A:5 * A] = pcy + 0.5 * ph

    return kernel


def _pick_tile_h(H, W, target_rows=1024):
    """Largest divisor d of H with d*W <= target_rows and (d*W) % 8 == 0 (the
    out-block sublane constraint); whole image if already small enough.  If no
    divisor satisfies both, take the smallest valid tile (bounds per-tile
    VMEM intermediates instead of silently using the whole image)."""
    if H * W <= target_rows:
        return H
    cands = [d for d in range(1, H + 1)
             if H % d == 0 and ((d * W) % 8 == 0 or d == H)]
    fit = [d for d in cands if d * W <= target_rows]
    return max(fit) if fit else min(cands)


def rpn_head_and_decode(x, head_params, anchor_centers, A, *,
                        compute_dtype=jnp.bfloat16, target_rows=1024):
    """Fused RPNHead (3x3 conv + ReLU + 1x1 cls/bbox) + BoxCoder.decode.

    x:              (N, C, H, W) feature map (NCHW, like PyTorch).
    anchor_centers: (H*W, 4*A)   per-pixel anchors in center form
                    [acx | acy | aw | ah] (groups of A), rows ordered (h, w).
    Returns (N, H*W, 5*A) float32 with columns [cls | x1 | y1 | x2 | y2]
    (each group of width A), rows ordered (h, w).
    """
    N, C, H, W = x.shape
    w_conv, b_conv, w_cls, b_cls, w_bbox, b_bbox = head_params

    # NCHW -> NHWC + 1-pixel zero halo, cast to bf16 (halves HBM + VMEM bytes;
    # MXU accumulation stays f32 in the kernel).
    xp = jnp.pad(jnp.transpose(x, (0, 2, 3, 1)),
                 ((0, 0), (1, 1), (1, 1), (0, 0))).astype(compute_dtype)

    # Conv taps packed per ky as a (3C, C) matrix (kx-major input rows) so the
    # conv is 3 matmuls with K = 3C instead of 9 with K = C.
    w3 = jnp.transpose(w_conv, (2, 3, 1, 0)).reshape(3, 3 * C, C)
    w3 = w3.astype(compute_dtype)
    b1 = b_conv.reshape(1, C).astype(jnp.float32)

    # Fused head weight: columns [cls(A) | dx(A) | dy(A) | dw(A) | dh(A)],
    # zero-padded to HEAD_W lanes (lane-dense MXU output).
    wc = w_cls.reshape(A, C)
    wb = w_bbox.reshape(A, 4, C).transpose(1, 0, 2).reshape(4 * A, C)
    w_head = jnp.concatenate([wc, wb], axis=0).T                     # (C, 5A)
    b_head = jnp.concatenate(
        [b_cls.reshape(A), b_bbox.reshape(A, 4).T.reshape(4 * A)]
    ).reshape(1, 5 * A)
    HEAD_W = max(128, int(pl.cdiv(5 * A, 128)) * 128)
    w_head = jnp.pad(w_head, ((0, 0), (0, HEAD_W - 5 * A))).astype(compute_dtype)
    b_head = jnp.pad(b_head, ((0, 0), (0, HEAD_W - 5 * A))).astype(jnp.float32)

    TILE_H = _pick_tile_h(H, W, target_rows)
    NT = H // TILE_H
    T = TILE_H * W
    OUT_W = 5 * A

    kernel = _make_fused_kernel(A, C, W, TILE_H)

    # VMEM budget: double-buffered blocks + per-tile intermediates, clamped
    # generation-aware (v7x only has 64 MiB per TensorCore).
    # TODO(synk): FPN levels whose padded bf16 image does not fit VMEM need a
    # manual halo DMA (pl.ANY + make_async_copy per tile) instead of
    # whole-image residency; not needed at these shapes.
    esize = jnp.dtype(compute_dtype).itemsize
    x_blk = (H + 2) * (W + 2) * C * esize
    anch_blk = H * W * 4 * A * 4
    out_blk = T * OUT_W * 4
    w_blk = (9 * C * C + C * HEAD_W) * esize + (C + HEAD_W) * 4
    interm = ((TILE_H + 2) * (W + 2) * C + T * 3 * C) * esize \
        + T * (C + HEAD_W) * 4
    vmem_need = 2 * (x_blk + anch_blk + out_blk + w_blk) + interm
    vmem_limit = int(min(max(vmem_need, 32 * 2 ** 20),
                         int(0.85 * _vmem_cap_bytes())))

    R = N * H * W
    cost = pl.CostEstimate(
        flops=2 * R * C * (9 * C + HEAD_W),
        transcendentals=2 * R * A,
        bytes_accessed=int(xp.size) * esize + int(anchor_centers.size) * 4
        + (9 * C * C + C * HEAD_W) * esize + R * OUT_W * 4,
    )

    out = pl.pallas_call(
        kernel,
        out_shape=jax.ShapeDtypeStruct((N, H * W, OUT_W), jnp.float32),
        grid=(N, NT),
        in_specs=[
            # Whole padded image; block index ignores t (fetched once/image).
            pl.BlockSpec((None, H + 2, W + 2, C), lambda n, t: (n, 0, 0, 0)),
            # Anchor-center slab: resident across BOTH grid axes.
            pl.BlockSpec((H * W, 4 * A), lambda n, t: (0, 0)),
            pl.BlockSpec((3, 3 * C, C), lambda n, t: (0, 0, 0)),
            pl.BlockSpec((1, C), lambda n, t: (0, 0)),
            pl.BlockSpec((C, HEAD_W), lambda n, t: (0, 0)),
            pl.BlockSpec((1, HEAD_W), lambda n, t: (0, 0)),
        ],
        out_specs=pl.BlockSpec((None, T, OUT_W), lambda n, t: (n, t, 0)),
        compiler_params=pltpu.CompilerParams(
            # Tile axis carries no accumulator (disjoint output blocks) -> both
            # axes parallel so v7x's 2 TensorCores get work even at N=1.
            dimension_semantics=("parallel", "parallel"),
            vmem_limit_bytes=vmem_limit),
        cost_estimate=cost,
    )(xp, anchor_centers.astype(jnp.float32), w3, b1, w_head, b_head)
    return out


# ----------------------------------------------------------------------------
# Plain-JAX glue: anchors, top-k, clipping, NMS (data-dependent control flow)
# ----------------------------------------------------------------------------
def generate_base_anchors(sizes, aspect_ratios):
    scales = jnp.asarray(sizes, jnp.float32)
    ratios = jnp.asarray(aspect_ratios, jnp.float32)
    h_ratios = jnp.sqrt(ratios)
    w_ratios = 1.0 / h_ratios
    ws = (w_ratios[:, None] * scales[None, :]).reshape(-1)
    hs = (h_ratios[:, None] * scales[None, :]).reshape(-1)
    base = jnp.stack([-ws, -hs, ws, hs], axis=1) / 2.0
    return jnp.round(base)                                            # (A, 4)


def grid_anchors(base, H, W, stride_h, stride_w):
    """Per-image anchors, shape (H*W, A, 4), rows ordered (h, w)."""
    shifts_x = jnp.arange(W, dtype=jnp.float32) * stride_w
    shifts_y = jnp.arange(H, dtype=jnp.float32) * stride_h
    sy, sx = jnp.meshgrid(shifts_y, shifts_x, indexing="ij")
    shifts = jnp.stack([sx.reshape(-1), sy.reshape(-1),
                        sx.reshape(-1), sy.reshape(-1)], axis=1)      # (H*W, 4)
    return shifts[:, None, :] + base[None, :, :]                      # (H*W, A, 4)


def compute_objectness_and_proposals(features, head_params, image_size, A):
    """Runs the fused Pallas kernel; returns box_cls (N, M) and proposals
    (N, M, 4), M = H*W*A, rows/cols ordered (h, w, a)."""
    N, C, H, W = features.shape
    base = generate_base_anchors((8.0,), (0.5, 1.0, 2.0))
    assert int(base.shape[0]) == A
    stride_h = image_size[0] / H
    stride_w = image_size[1] / W
    anchors_hwA4 = grid_anchors(base, H, W, stride_h, stride_w)       # (HW, A, 4)

    # Pre-centered anchors (acx, acy, aw, ah): kernel epilogue skips the
    # corner->center conversion and the per-tile anchor relayout.
    aw = anchors_hwA4[:, :, 2] - anchors_hwA4[:, :, 0]
    ah = anchors_hwA4[:, :, 3] - anchors_hwA4[:, :, 1]
    acx = anchors_hwA4[:, :, 0] + 0.5 * aw
    acy = anchors_hwA4[:, :, 1] + 0.5 * ah
    anchor_centers = jnp.concatenate([acx, acy, aw, ah], axis=1)      # (HW, 4A)

    fused = rpn_head_and_decode(features, head_params, anchor_centers, A)
    M = H * W * A
    box_cls = fused[:, :, 0:A].reshape(N, M)
    coords = [fused[:, :, (1 + c) * A:(2 + c) * A] for c in range(4)]
    proposals = jnp.stack(coords, axis=-1).reshape(N, M, 4)
    return box_cls, proposals, anchors_hwA4


def get_top_n_anchors_index(box_cls_2d, num_anchors_per_features, pre_nms_top_n):
    index_list = []
    offset = 0
    for n in num_anchors_per_features:
        obj = box_cls_2d[:, offset:offset + n]
        k = min(n, pre_nms_top_n)
        _, top_idx = jax.lax.top_k(obj, k)
        index_list.append(top_idx + offset)
        offset += n
    return jnp.concatenate(index_list, axis=1)


def nms_keep_mask(boxes, scores, iou_thresh):
    """Greedy NMS; boxes with score == -inf are ignored.  Returns bool mask."""
    K = boxes.shape[0]
    order = jnp.argsort(-scores)
    b = boxes[order]
    s = scores[order]
    x1, y1, x2, y2 = b[:, 0], b[:, 1], b[:, 2], b[:, 3]
    areas = (x2 - x1) * (y2 - y1)
    valid0 = s > -jnp.inf
    idx = jnp.arange(K)

    def body(i, keep):
        is_kept = keep[i] & valid0[i]
        xx1 = jnp.maximum(x1[i], x1)
        yy1 = jnp.maximum(y1[i], y1)
        xx2 = jnp.minimum(x2[i], x2)
        yy2 = jnp.minimum(y2[i], y2)
        inter = jnp.maximum(xx2 - xx1, 0.0) * jnp.maximum(yy2 - yy1, 0.0)
        iou = inter / (areas[i] + areas - inter + 1e-9)
        suppress = (iou > iou_thresh) & (idx > i) & is_kept
        return keep & ~suppress

    keep_sorted = jax.lax.fori_loop(0, K, body, jnp.ones((K,), bool)) & valid0
    keep = jnp.zeros((K,), bool).at[order].set(keep_sorted)
    return keep


def filter_proposals(proposals, box_cls, list_images_size,
                     num_anchors_per_features, pre_nms_top_n, post_nms_top_n,
                     score_thresh, nms_thresh, min_size):
    N = proposals.shape[0]
    box_cls = box_cls.reshape(N, -1)
    levels = jnp.concatenate([
        jnp.full((n,), li, dtype=jnp.int32)
        for li, n in enumerate(num_anchors_per_features)], axis=0)
    levels = jnp.broadcast_to(levels[None, :], box_cls.shape)

    top_idx = get_top_n_anchors_index(box_cls, num_anchors_per_features,
                                      pre_nms_top_n)
    batch_idx = jnp.arange(N)[:, None]
    scores = jax.nn.sigmoid(box_cls[batch_idx, top_idx])              # (N, K)
    levels = levels[batch_idx, top_idx]
    props = proposals[batch_idx, top_idx]                             # (N, K, 4)

    boxes_out, scores_out, valid_out = [], [], []
    for i in range(N):
        b, s, lv = props[i], scores[i], levels[i]
        img_h, img_w = list_images_size[i]
        x1 = jnp.clip(b[:, 0], 0.0, float(img_w))
        y1 = jnp.clip(b[:, 1], 0.0, float(img_h))
        x2 = jnp.clip(b[:, 2], 0.0, float(img_w))
        y2 = jnp.clip(b[:, 3], 0.0, float(img_h))
        b = jnp.stack([x1, y1, x2, y2], axis=1)
        keep = ((x2 - x1) >= min_size) & ((y2 - y1) >= min_size) & \
               (s >= score_thresh)
        s_masked = jnp.where(keep, s, -jnp.inf)
        # batched_nms: offset boxes per level so levels never suppress each other
        max_coord = jnp.max(b) + 1.0
        b_for_nms = b + (lv.astype(jnp.float32) * max_coord)[:, None]
        keep_nms = nms_keep_mask(b_for_nms, s_masked, nms_thresh)
        valid = keep & keep_nms
        rank = jnp.where(valid, s, -jnp.inf)
        sel = jnp.argsort(-rank)[:post_nms_top_n]
        boxes_out.append(b[sel])
        scores_out.append(jnp.where(valid[sel], s[sel], 0.0))
        valid_out.append(valid[sel])
    # NOTE: PyTorch returns variable-length lists; here we return fixed-size
    # (post_nms_top_n) arrays padded with zeros + a validity mask.
    return boxes_out, scores_out, valid_out


# ----------------------------------------------------------------------------
# Full RPN forward (eval mode; single feature level)
# ----------------------------------------------------------------------------
def rpn_forward(features, list_images_size, image_size, head_params, A,
                pre_nms_top_n, post_nms_top_n, score_thresh, nms_thresh):
    N, C, H, W = features.shape
    M = H * W * A
    box_cls, proposals, _ = compute_objectness_and_proposals(
        features, head_params, image_size, A)
    proposals_list, scores_list, valid_list = filter_proposals(
        proposals, box_cls, list_images_size, [M],
        pre_nms_top_n, post_nms_top_n, score_thresh, nms_thresh, min_size=1.0)
    rpn_losses = {}
    # TODO(synk): training branch (Matcher / BalancedPositiveNegativeSampler /
    # smooth-L1 + BCE losses) not implemented; eval-mode forward returns {}.
    return (proposals_list, scores_list, valid_list), rpn_losses


# ----------------------------------------------------------------------------
# Pure-JAX reference (im2col conv + heads + decode) for a correctness check
# ----------------------------------------------------------------------------
def _reference_head_decode(x, head_params, anchors_hwA4, A):
    N, C, H, W = x.shape
    w_conv, b_conv, w_cls, b_cls, w_bbox, b_bbox = head_params
    hp = jax.lax.Precision.HIGHEST
    xp = jnp.pad(x, ((0, 0), (0, 0), (1, 1), (1, 1)))
    patch = jnp.stack([xp[:, :, dy:dy + H, dx:dx + W]
                       for dy in range(3) for dx in range(3)], axis=2)
    patch = jnp.transpose(patch, (0, 3, 4, 1, 2)).reshape(N * H * W, C * 9)
    hidden = jnp.maximum(
        jnp.dot(patch, w_conv.reshape(C, C * 9).T, precision=hp) + b_conv, 0.0)
    cls = jnp.dot(hidden, w_cls.reshape(A, C).T, precision=hp) + b_cls
    deltas = jnp.dot(hidden, w_bbox.reshape(4 * A, C).T, precision=hp) + b_bbox
    deltas = deltas.reshape(N, H * W * A, 4)
    anch = jnp.broadcast_to(anchors_hwA4.reshape(1, H * W * A, 4),
                            (N, H * W * A, 4))
    aw = anch[..., 2] - anch[..., 0]
    ah = anch[..., 3] - anch[..., 1]
    acx = anch[..., 0] + 0.5 * aw
    acy = anch[..., 1] + 0.5 * ah
    pcx = deltas[..., 0] * aw + acx
    pcy = deltas[..., 1] * ah + acy
    pw = jnp.exp(jnp.minimum(deltas[..., 2], BBOX_XFORM_CLIP)) * aw
    ph = jnp.exp(jnp.minimum(deltas[..., 3], BBOX_XFORM_CLIP)) * ah
    boxes = jnp.stack([pcx - 0.5 * pw, pcy - 0.5 * ph,
                       pcx + 0.5 * pw, pcy + 0.5 * ph], axis=-1)
    return cls.reshape(N, H * W * A), boxes


if __name__ == "__main__":
    key = jax.random.PRNGKey(0)
    N, C, H, W = 2, 4, 16, 16
    A = 3
    image_size = (32, 32)                    # padded image size
    list_images_size = [(30, 28), (32, 32)]  # resized-before-padding sizes

    k1, k2, k3, k4 = jax.random.split(key, 4)
    features = jax.random.normal(k1, (N, C, H, W), jnp.float32)
    # Deterministic head params (torchvision-style: N(0, 0.01), zero bias).
    w_conv = 0.01 * jax.random.normal(k2, (C, C, 3, 3), jnp.float32)
    b_conv = jnp.zeros((C,), jnp.float32)
    w_cls = 0.01 * jax.random.normal(k3, (A, C, 1, 1), jnp.float32)
    b_cls = jnp.zeros((A,), jnp.float32)
    w_bbox = 0.01 * jax.random.normal(k4, (4 * A, C, 1, 1), jnp.float32)
    b_bbox = jnp.zeros((4 * A,), jnp.float32)
    head_params = (w_conv, b_conv, w_cls, b_cls, w_bbox, b_bbox)

    # Sanity-check the fused bf16 kernel against the pure-JAX f32 reference.
    box_cls, proposals, anchors_hwA4 = compute_objectness_and_proposals(
        features, head_params, image_size, A)
    ref_cls, ref_boxes = _reference_head_decode(features, head_params,
                                                anchors_hwA4, A)
    assert jnp.allclose(box_cls, ref_cls, atol=2e-2, rtol=2e-2)
    assert jnp.allclose(proposals, ref_boxes, atol=2e-2, rtol=2e-2)

    (proposals_list, scores_list, valid_list), rpn_losses = rpn_forward(
        features, list_images_size, image_size, head_params, A,
        pre_nms_top_n=200, post_nms_top_n=50,
        score_thresh=0.0, nms_thresh=0.7)

    for p, s, v in zip(proposals_list, scores_list, valid_list):
        jax.block_until_ready(p)
        jax.block_until_ready(s)
        jax.block_until_ready(v)
    print("KERNEL_OK")
</pallas_src>

<mosaic_0001>
module attributes {stable_mosaic.version = 11 : i64} {
  func.func @kernel(%arg0: i32, %arg1: i32, %arg2: memref<1x18x18x4xbf16, #tpu.memory_space<vmem>>, %arg3: memref<256x12xf32, #tpu.memory_space<vmem>>, %arg4: memref<3x12x4xbf16, #tpu.memory_space<vmem>>, %arg5: memref<1x4xf32, #tpu.memory_space<vmem>>, %arg6: memref<4x128xbf16, #tpu.memory_space<vmem>>, %arg7: memref<1x128xf32, #tpu.memory_space<vmem>>, %arg8: memref<1x256x15xf32, #tpu.memory_space<vmem>>) attributes {dimension_semantics = [#tpu.dimension_semantics<parallel>, #tpu.dimension_semantics<parallel>], iteration_bounds = array<i64: 2, 1>, scalar_prefetch = 0 : i64, scratch_operands = 0 : i64, tpu.core_type = #tpu.core_type<tc>, window_params = [{transform_indices = @transform_0, window_bounds = array<i64: 1, 18, 18, 4>}, {pipeline_mode = #tpu.pipeline_mode<synchronous>, transform_indices = @transform_1, window_bounds = array<i64: 256, 12>}, {pipeline_mode = #tpu.pipeline_mode<synchronous>, transform_indices = @transform_2, window_bounds = array<i64: 3, 12, 4>}, {pipeline_mode = #tpu.pipeline_mode<synchronous>, transform_indices = @transform_3, window_bounds = array<i64: 1, 4>}, {pipeline_mode = #tpu.pipeline_mode<synchronous>, transform_indices = @transform_4, window_bounds = array<i64: 4, 128>}, {pipeline_mode = #tpu.pipeline_mode<synchronous>, transform_indices = @transform_5, window_bounds = array<i64: 1, 128>}, {transform_indices = @transform_6, window_bounds = array<i64: 1, 256, 15>}]} {
    %c16_i32 = arith.constant 16 : i32
    %0 = arith.muli %arg1, %c16_i32 : i32
    %c0 = arith.constant 0 : index
    %1 = arith.index_cast %0 : i32 to index
    %c0_0 = arith.constant 0 : index
    %c0_1 = arith.constant 0 : index
    %2 = vector.load %arg2[%c0, %1, %c0_0, %c0_1] : memref<1x18x18x4xbf16, #tpu.memory_space<vmem>>, vector<1x18x18x4xbf16>
    %3 = vector.shape_cast %2 : vector<1x18x18x4xbf16> to vector<18x18x4xbf16>
    %cst = arith.constant 0.000000e+00 : f32
    %4 = vector.broadcast %cst : f32 to vector<256x4xf32>
    %5 = vector.extract_strided_slice %3 {offsets = [0, 0, 0], sizes = [16, 18, 4], strides = [1, 1, 1]} : vector<18x18x4xbf16> to vector<16x18x4xbf16>
    %6 = vector.extract_strided_slice %5 {offsets = [0, 0, 0], sizes = [16, 16, 4], strides = [1, 1, 1]} : vector<16x18x4xbf16> to vector<16x16x4xbf16>
    %7 = vector.extract_strided_slice %5 {offsets = [0, 1, 0], sizes = [16, 16, 4], strides = [1, 1, 1]} : vector<16x18x4xbf16> to vector<16x16x4xbf16>
    %8 = vector.extract_strided_slice %5 {offsets = [0, 2, 0], sizes = [16, 16, 4], strides = [1, 1, 1]} : vector<16x18x4xbf16> to vector<16x16x4xbf16>
    %9 = tpu.concatenate %6, %7, %8 in 2 : vector<16x16x4xbf16>, vector<16x16x4xbf16>, vector<16x16x4xbf16> -> vector<16x16x12xbf16>
    %10 = vector.shape_cast %9 : vector<16x16x12xbf16> to vector<256x12xbf16>
    %c0_2 = arith.constant 0 : index
    %c0_3 = arith.constant 0 : index
    %c0_4 = arith.constant 0 : index
    %11 = vector.load %arg4[%c0_2, %c0_3, %c0_4] : memref<3x12x4xbf16, #tpu.memory_space<vmem>>, vector<1x12x4xbf16>
    %12 = vector.shape_cast %11 : vector<1x12x4xbf16> to vector<12x4xbf16>
    %cst_5 = arith.constant dense<0.000000e+00> : vector<256x4xf32>
    %13 = tpu.matmul %10, %12, %cst_5 {dimension_numbers = #tpu.dot_dimension_numbers<[1], [0], [0], [1], [0, 0, 1, 1], [], []>} : vector<256x12xbf16>, vector<12x4xbf16>, vector<256x4xf32> -> vector<256x4xf32>
    %14 = arith.addf %4, %13 : vector<256x4xf32>
    %15 = vector.extract_strided_slice %3 {offsets = [1, 0, 0], sizes = [16, 18, 4], strides = [1, 1, 1]} : vector<18x18x4xbf16> to vector<16x18x4xbf16>
    %16 = vector.extract_strided_slice %15 {offsets = [0, 0, 0], sizes = [16, 16, 4], strides = [1, 1, 1]} : vector<16x18x4xbf16> to vector<16x16x4xbf16>
    %17 = vector.extract_strided_slice %15 {offsets = [0, 1, 0], sizes = [16, 16, 4], strides = [1, 1, 1]} : vector<16x18x4xbf16> to vector<16x16x4xbf16>
    %18 = vector.extract_strided_slice %15 {offsets = [0, 2, 0], sizes = [16, 16, 4], strides = [1, 1, 1]} : vector<16x18x4xbf16> to vector<16x16x4xbf16>
    %19 = tpu.concatenate %16, %17, %18 in 2 : vector<16x16x4xbf16>, vector<16x16x4xbf16>, vector<16x16x4xbf16> -> vector<16x16x12xbf16>
    %20 = vector.shape_cast %19 : vector<16x16x12xbf16> to vector<256x12xbf16>
    %c1 = arith.constant 1 : index
    %c0_6 = arith.constant 0 : index
    %c0_7 = arith.constant 0 : index
    %21 = vector.load %arg4[%c1, %c0_6, %c0_7] : memref<3x12x4xbf16, #tpu.memory_space<vmem>>, vector<1x12x4xbf16>
    %22 = vector.shape_cast %21 : vector<1x12x4xbf16> to vector<12x4xbf16>
    %cst_8 = arith.constant dense<0.000000e+00> : vector<256x4xf32>
    %23 = tpu.matmul %20, %22, %cst_8 {dimension_numbers = #tpu.dot_dimension_numbers<[1], [0], [0], [1], [0, 0, 1, 1], [], []>} : vector<256x12xbf16>, vector<12x4xbf16>, vector<256x4xf32> -> vector<256x4xf32>
    %24 = arith.addf %14, %23 : vector<256x4xf32>
    %25 = vector.extract_strided_slice %3 {offsets = [2, 0, 0], sizes = [16, 18, 4], strides = [1, 1, 1]} : vector<18x18x4xbf16> to vector<16x18x4xbf16>
    %26 = vector.extract_strided_slice %25 {offsets = [0, 0, 0], sizes = [16, 16, 4], strides = [1, 1, 1]} : vector<16x18x4xbf16> to vector<16x16x4xbf16>
    %27 = vector.extract_strided_slice %25 {offsets = [0, 1, 0], sizes = [16, 16, 4], strides = [1, 1, 1]} : vector<16x18x4xbf16> to vector<16x16x4xbf16>
    %28 = vector.extract_strided_slice %25 {offsets = [0, 2, 0], sizes = [16, 16, 4], strides = [1, 1, 1]} : vector<16x18x4xbf16> to vector<16x16x4xbf16>
    %29 = tpu.concatenate %26, %27, %28 in 2 : vector<16x16x4xbf16>, vector<16x16x4xbf16>, vector<16x16x4xbf16> -> vector<16x16x12xbf16>
    %30 = vector.shape_cast %29 : vector<16x16x12xbf16> to vector<256x12xbf16>
    %c2 = arith.constant 2 : index
    %c0_9 = arith.constant 0 : index
    %c0_10 = arith.constant 0 : index
    %31 = vector.load %arg4[%c2, %c0_9, %c0_10] : memref<3x12x4xbf16, #tpu.memory_space<vmem>>, vector<1x12x4xbf16>
    %32 = vector.shape_cast %31 : vector<1x12x4xbf16> to vector<12x4xbf16>
    %cst_11 = arith.constant dense<0.000000e+00> : vector<256x4xf32>
    %33 = tpu.matmul %30, %32, %cst_11 {dimension_numbers = #tpu.dot_dimension_numbers<[1], [0], [0], [1], [0, 0, 1, 1], [], []>} : vector<256x12xbf16>, vector<12x4xbf16>, vector<256x4xf32> -> vector<256x4xf32>
    %34 = arith.addf %24, %33 : vector<256x4xf32>
    %c0_12 = arith.constant 0 : index
    %c0_13 = arith.constant 0 : index
    %35 = vector.load %arg5[%c0_12, %c0_13] : memref<1x4xf32, #tpu.memory_space<vmem>>, vector<1x4xf32>
    %36 = vector.broadcast %35 : vector<1x4xf32> to vector<256x4xf32>
    %37 = arith.addf %34, %36 : vector<256x4xf32>
    %cst_14 = arith.constant 0.000000e+00 : f32
    %38 = vector.broadcast %cst_14 : f32 to vector<256x4xf32>
    %39 = arith.maximumf %37, %38 : vector<256x4xf32>
    %40 = arith.truncf %39 : vector<256x4xf32> to vector<256x4xbf16>
    %c0_15 = arith.constant 0 : index
    %c0_16 = arith.constant 0 : index
    %41 = vector.load %arg6[%c0_15, %c0_16] : memref<4x128xbf16, #tpu.memory_space<vmem>>, vector<4x128xbf16>
    %cst_17 = arith.constant dense<0.000000e+00> : vector<256x128xf32>
    %42 = tpu.matmul %40, %41, %cst_17 {dimension_numbers = #tpu.dot_dimension_numbers<[1], [0], [0], [1], [0, 0, 1, 1], [], []>} : vector<256x4xbf16>, vector<4x128xbf16>, vector<256x128xf32> -> vector<256x128xf32>
    %c0_18 = arith.constant 0 : index
    %c0_19 = arith.constant 0 : index
    %43 = vector.load %arg7[%c0_18, %c0_19] : memref<1x128xf32, #tpu.memory_space<vmem>>, vector<1x128xf32>
    %44 = vector.broadcast %43 : vector<1x128xf32> to vector<256x128xf32>
    %45 = arith.addf %42, %44 : vector<256x128xf32>
    %46 = vector.extract_strided_slice %45 {offsets = [0, 0], sizes = [256, 3], strides = [1, 1]} : vector<256x128xf32> to vector<256x3xf32>
    %47 = vector.extract_strided_slice %45 {offsets = [0, 3], sizes = [256, 3], strides = [1, 1]} : vector<256x128xf32> to vector<256x3xf32>
    %48 = vector.extract_strided_slice %45 {offsets = [0, 6], sizes = [256, 3], strides = [1, 1]} : vector<256x128xf32> to vector<256x3xf32>
    %49 = vector.extract_strided_slice %45 {offsets = [0, 9], sizes = [256, 3], strides = [1, 1]} : vector<256x128xf32> to vector<256x3xf32>
    %50 = vector.extract_strided_slice %45 {offsets = [0, 12], sizes = [256, 3], strides = [1, 1]} : vector<256x128xf32> to vector<256x3xf32>
    %c256_i32 = arith.constant 256 : i32
    %51 = arith.muli %arg1, %c256_i32 : i32
    %52 = tpu.assume_multiple %51, 8 : i32
    %53 = arith.index_cast %52 : i32 to index
    %c0_20 = arith.constant 0 : index
    %54 = vector.load %arg3[%53, %c0_20] : memref<256x12xf32, #tpu.memory_space<vmem>>, vector<256x12xf32>
    %55 = vector.extract_strided_slice %54 {offsets = [0, 0], sizes = [256, 3], strides = [1, 1]} : vector<256x12xf32> to vector<256x3xf32>
    %56 = vector.extract_strided_slice %54 {offsets = [0, 3], sizes = [256, 3], strides = [1, 1]} : vector<256x12xf32> to vector<256x3xf32>
    %57 = vector.extract_strided_slice %54 {offsets = [0, 6], sizes = [256, 3], strides = [1, 1]} : vector<256x12xf32> to vector<256x3xf32>
    %58 = vector.extract_strided_slice %54 {offsets = [0, 9], sizes = [256, 3], strides = [1, 1]} : vector<256x12xf32> to vector<256x3xf32>
    %59 = arith.mulf %47, %57 : vector<256x3xf32>
    %60 = arith.addf %59, %55 : vector<256x3xf32>
    %61 = arith.mulf %48, %58 : vector<256x3xf32>
    %62 = arith.addf %61, %56 : vector<256x3xf32>
    %cst_21 = arith.constant 4.13516665 : f32
    %63 = vector.broadcast %cst_21 : f32 to vector<256x3xf32>
    %64 = arith.minimumf %49, %63 : vector<256x3xf32>
    %65 = math.exp %64 : vector<256x3xf32>
    %66 = arith.mulf %65, %57 : vector<256x3xf32>
    %cst_22 = arith.constant 4.13516665 : f32
    %67 = vector.broadcast %cst_22 : f32 to vector<256x3xf32>
    %68 = arith.minimumf %50, %67 : vector<256x3xf32>
    %69 = math.exp %68 : vector<256x3xf32>
    %70 = arith.mulf %69, %58 : vector<256x3xf32>
    %c0_23 = arith.constant 0 : index
    %c0_24 = arith.constant 0 : index
    %c0_25 = arith.constant 0 : index
    %71 = vector.load %arg8[%c0_23, %c0_24, %c0_25] : memref<1x256x15xf32, #tpu.memory_space<vmem>>, vector<1x256x3xf32>
    %72 = vector.shape_cast %71 : vector<1x256x3xf32> to vector<256x3xf32>
    %73 = vector.shape_cast %46 : vector<256x3xf32> to vector<1x256x3xf32>
    tpu.vector_store %arg8[%c0_23, %c0_24, %c0_25], %73 {strides = array<i32>} : memref<1x256x15xf32, #tpu.memory_space<vmem>>, vector<1x256x3xf32>,
    %cst_26 = arith.constant 5.000000e-01 : f32
    %74 = vector.broadcast %cst_26 : f32 to vector<256x3xf32>
    %75 = arith.mulf %74, %66 : vector<256x3xf32>
    %76 = arith.subf %60, %75 : vector<256x3xf32>
    %c0_27 = arith.constant 0 : index
    %c0_28 = arith.constant 0 : index
    %c3 = arith.constant 3 : index
    %77 = vector.load %arg8[%c0_27, %c0_28, %c3] : memref<1x256x15xf32, #tpu.memory_space<vmem>>, vector<1x256x3xf32>
    %78 = vector.shape_cast %77 : vector<1x256x3xf32> to vector<256x3xf32>
    %79 = vector.shape_cast %76 : vector<256x3xf32> to vector<1x256x3xf32>
    tpu.vector_store %arg8[%c0_27, %c0_28, %c3], %79 {strides = array<i32>} : memref<1x256x15xf32, #tpu.memory_space<vmem>>, vector<1x256x3xf32>,
    %cst_29 = arith.constant 5.000000e-01 : f32
    %80 = vector.broadcast %cst_29 : f32 to vector<256x3xf32>
    %81 = arith.mulf %80, %70 : vector<256x3xf32>
    %82 = arith.subf %62, %81 : vector<256x3xf32>
    %c0_30 = arith.constant 0 : index
    %c0_31 = arith.constant 0 : index
    %c6 = arith.constant 6 : index
    %83 = vector.load %arg8[%c0_30, %c0_31, %c6] : memref<1x256x15xf32, #tpu.memory_space<vmem>>, vector<1x256x3xf32>
    %84 = vector.shape_cast %83 : vector<1x256x3xf32> to vector<256x3xf32>
    %85 = vector.shape_cast %82 : vector<256x3xf32> to vector<1x256x3xf32>
    tpu.vector_store %arg8[%c0_30, %c0_31, %c6], %85 {strides = array<i32>} : memref<1x256x15xf32, #tpu.memory_space<vmem>>, vector<1x256x3xf32>,
    %cst_32 = arith.constant 5.000000e-01 : f32
    %86 = vector.broadcast %cst_32 : f32 to vector<256x3xf32>
    %87 = arith.mulf %86, %66 : vector<256x3xf32>
    %88 = arith.addf %60, %87 : vector<256x3xf32>
    %c0_33 = arith.constant 0 : index
    %c0_34 = arith.constant 0 : index
    %c9 = arith.constant 9 : index
    %89 = vector.load %arg8[%c0_33, %c0_34, %c9] : memref<1x256x15xf32, #tpu.memory_space<vmem>>, vector<1x256x3xf32>
    %90 = vector.shape_cast %89 : vector<1x256x3xf32> to vector<256x3xf32>
    %91 = vector.shape_cast %88 : vector<256x3xf32> to vector<1x256x3xf32>
    tpu.vector_store %arg8[%c0_33, %c0_34, %c9], %91 {strides = array<i32>} : memref<1x256x15xf32, #tpu.memory_space<vmem>>, vector<1x256x3xf32>,
    %cst_35 = arith.constant 5.000000e-01 : f32
    %92 = vector.broadcast %cst_35 : f32 to vector<256x3xf32>
    %93 = arith.mulf %92, %70 : vector<256x3xf32>
    %94 = arith.addf %62, %93 : vector<256x3xf32>
    %c0_36 = arith.constant 0 : index
    %c0_37 = arith.constant 0 : index
    %c12 = arith.constant 12 : index
    %95 = vector.load %arg8[%c0_36, %c0_37, %c12] : memref<1x256x15xf32, #tpu.memory_space<vmem>>, vector<1x256x3xf32>
    %96 = vector.shape_cast %95 : vector<1x256x3xf32> to vector<256x3xf32>
    %97 = vector.shape_cast %94 : vector<256x3xf32> to vector<1x256x3xf32>
    tpu.vector_store %arg8[%c0_36, %c0_37, %c12], %97 {strides = array<i32>} : memref<1x256x15xf32, #tpu.memory_space<vmem>>, vector<1x256x3xf32>,
    return
  }
  func.func @transform_0(%arg0: i32, %arg1: i32) -> (i32, i32, i32, i32) {
    %c0_i32 = arith.constant 0 : i32
    %c0_i32_0 = arith.constant 0 : i32
    %c0_i32_1 = arith.constant 0 : i32
    %c0_i32_2 = arith.constant 0 : i32
    return %arg0, %c0_i32, %c0_i32_0, %c0_i32_1 : i32, i32, i32, i32
  }
  func.func @transform_1(%arg0: i32, %arg1: i32) -> (i32, i32) {
    %c0_i32 = arith.constant 0 : i32
    %c0_i32_0 = arith.constant 0 : i32
    %c0_i32_1 = arith.constant 0 : i32
    return %c0_i32, %c0_i32_0 : i32, i32
  }
  func.func @transform_2(%arg0: i32, %arg1: i32) -> (i32, i32, i32) {
    %c0_i32 = arith.constant 0 : i32
    %c0_i32_0 = arith.constant 0 : i32
    %c0_i32_1 = arith.constant 0 : i32
    %c0_i32_2 = arith.constant 0 : i32
    return %c0_i32, %c0_i32_0, %c0_i32_1 : i32, i32, i32
  }
  func.func @transform_3(%arg0: i32, %arg1: i32) -> (i32, i32) {
    %c0_i32 = arith.constant 0 : i32
    %c0_i32_0 = arith.constant 0 : i32
    %c0_i32_1 = arith.constant 0 : i32
    return %c0_i32, %c0_i32_0 : i32, i32
  }
  func.func @transform_4(%arg0: i32, %arg1: i32) -> (i32, i32) {
    %c0_i32 = arith.constant 0 : i32
    %c0_i32_0 = arith.constant 0 : i32
    %c0_i32_1 = arith.constant 0 : i32
    return %c0_i32, %c0_i32_0 : i32, i32
  }
  func.func @transform_5(%arg0: i32, %arg1: i32) -> (i32, i32) {
    %c0_i32 = arith.constant 0 : i32
    %c0_i32_0 = arith.constant 0 : i32
    %c0_i32_1 = arith.constant 0 : i32
    return %c0_i32, %c0_i32_0 : i32, i32
  }
  func.func @transform_6(%arg0: i32, %arg1: i32) -> (i32, i32, i32) {
    %c0_i32 = arith.constant 0 : i32
    %c0_i32_0 = arith.constant 0 : i32
    return %arg0, %arg1, %c0_i32 : i32, i32, i32
  }
}

</mosaic_0001>

<bundles_post_ra>
// kernel: tpu_custom_call.1
= control target key start
LH: loop header
LB: loop body
LE: loop exit
PB: predicated region body
PF: predicated region fallthrough
CT: control target
= control target key end

     0   :  { %s3432_s21 = smov 0   ;;  %s3434_s22 = smov 0   ;;  %s5081_s0 = inlined_call_operand.vmem [shape: bf16[2,18,18,4], index: 0, kind: input, shape index: {}]   ;;  %s5082_s1 = inlined_call_operand.vmem [shape: f32[256,12], index: 1, kind: input, shape index: {}]   ;;  %s5083_s2 = inlined_call_operand.vmem [shape: bf16[3,12,4], index: 2, kind: input, shape index: {}]   ;;  %s5084_s3 = inlined_call_operand.vmem [shape: f32[1,4], index: 3, kind: input, shape index: {}]   ;;  %s5085_s4 = inlined_call_operand.vmem [shape: bf16[4,128], index: 4, kind: input, shape index: {}]   ;;  %s5086_s5 = inlined_call_operand.vmem [shape: f32[1,128], index: 5, kind: input, shape index: {}]   ;;  %s5087_s6 = inlined_call_operand.vmem [shape: f32[2,256,15], index: 6, kind: output, shape index: {}]  }
   0x1   :  { %s3436_s23 = smov 0  }
   0x2 LB: > { %s28_s24 = sadd.s32 1, %s3385_s22  ;;  %p2845_p0 = scmp.ge.s32.totalorder %s3389_s23, 1  ;;  %s3389_s23 = sphi %s3436_s23, %s16_s23   ;;  %s3385_s22 = sphi %s3434_s22, %s5207_s22   ;;  %s3381_s21 = sphi %s3432_s21, %s5206_s21  }
   0x3   : > { %p30_p1 = scmp.ge.s32.totalorder %s28_s24, 2  ;;  %p226_p2 = scmp.lt.s32.totalorder %s3389_s23, 3 }
   0x5   : > { %s5209_s24 = smov (%p30_p1, %s28_s24), 0  ;;  %p227_p3 = pnand %p2845_p0, %p226_p2 }
   0x7   : > { %230 = sbr.rel (%p227_p3) target bundleno = 970 (0x3ca), region = 44 }
   0xe   : > { %p260_p4 = scmp.lt.s32.totalorder %s3381_s21, 1  ;;  %vm908_vm0 = vcmask 1045504   ;;  %v3296_v0 = vld [vmem:[%s5083_s2] sm:$0x3f]   ;;  %vm687_vm1 = vcmask 1046528   ;;  %s3391_s7 = smov 8  }
   0xf   : > { %vm462_vm2 = vsmask.f32 7424  ;;  %3230 = vmatprep.subr.msk.bf16.mxu0 %vm908_vm0, %v3296_v0  ;;  %v1081_v1 = vsel %vm908_vm0, %v3296_v0, 0  ;;  %s3392_s8 = smov 4   ;;  %vm768_vm3 = vcmask 31744   ;;  %vm801_vm4 = vcmask 64512  }
  0x10   : > { %s5211_s21 = smov (!%p260_p4, %s3381_s21), 1  ;;  %3064 = vmatpush3.bf16.msra.mxu0 %v1081_v1  ;;  %vm875_vm5 = vcmask 97280   ;;  %vm1624_vm6 = vcmask 1041408   ;;  %s3393_s17 = smov 125   ;;  %vm2239_vm7 = vcmask 23552   ;;  %vm2464_vm8 = vcmask 48152  }
  0x11   : > { %s3233_s25 = smul.u32 216, %s5211_s21  ;;  %s3394_s27 = smov 3   ;;  %vm2497_vm9 = vcmask 72752   ;;  %vm2690_vm10 = vcmask 97352   ;;  %vm2723_vm11 = vcmask 121952  }
  0x12   : > { %s2960_s29 = sshll.u32 %s5211_s21, 8  ;;  %s3395_s21 = smov 122  }
  0x13   : > { %s3459_s30 = scalar_lea.vmem %s5081_s0, %s3233_s25  ;;  %s4346_s10 = scalar_lea.vmem %s5087_s6, %s2960_s29 }
  0x14   : > { %v3464_v2 = vld [vmem:[%s3459_s30] sm:$0xff]   ;;  %v3265_v3 = vld [vmem:[%s3459_s30 + $0x8] ss:$0 sps:$4 sm:$0x11]   ;;  %v3468_v4 = vld [vmem:[%s3459_s30 + $0xc] sm:$0xff]   ;;  %s3396_s11 = smov 6  }
  0x15   : > { %v688_v5 = vrot.slane %v3464_v2, 1  ;;  %v689_v6 = vrot.slane %v3265_v3, 1  ;;  %v464_v7 = vshrl.u32 %v3464_v2, 16  ;;  %v466_v8 = vshll.u32 %v3464_v2, 16  ;;  %v3480_v19 = vld [vmem:[%s3459_s30 + $0x24] sm:$0xff]   ;;  %v3487_v27 = vld [vmem:[%s3459_s30 + $0x18] sm:$0xff]  }
  0x16   : > { %v471_v9 = vshll.u32 %v3265_v3, 16  ;;  %v3267_v10 = vld [vmem:[%s3459_s30 + $0x14] ss:$0 sps:$4 sm:$0x11]   ;;  %v691_v11 = vrot.slane %v3468_v4, 1  ;;  %v476_v12 = vshrl.u32 %v3468_v4, 16 }
  0x17   : > { %v690_v13 = vsel %vm687_vm1, %v688_v5, %v689_v6  ;;  %v468_v14 = vrot.slane %v466_v8, 1  ;;  %v478_v15 = vshll.u32 %v3468_v4, 16  ;;  %v692_v17 = vrot.slane %v3267_v10, 1  ;;  %v3269_v22 = vld [vmem:[%s3459_s30 + $0x2c] ss:$0 sps:$4 sm:$0x11]  }
  0x18   : > { %736 = vrot.lane.b32.xlu1 %v690_v13, %s3391_s7  ;;  %v473_v16 = vrot.slane %v471_v9, 1  ;;  %v483_v18 = vshll.u32 %v3267_v10, 16  ;;  %v500_v25 = vshrl.u32 %v3480_v19, 16  ;;  %v502_v26 = vshll.u32 %v3480_v19, 16  ;;  %v3492_v32 = vld [vmem:[%s3459_s30 + $0x3c] sm:$0xff]   ;;  %v3501_v41 = vld [vmem:[%s3459_s30 + $0x30] sm:$0xff]  }
  0x19   : > { %v469_v20 = vor.u32 %v468_v14, %v464_v7  ;;  %v480_v21 = vrot.slane %v478_v15, 1  ;;  %v693_v23 = vsel %vm687_vm1, %v691_v11, %v692_v17  ;;  %v507_v30 = vshll.u32 %v3269_v22, 16  ;;  %v3271_v31 = vld [vmem:[%s3459_s30 + $0x20] ss:$0 sps:$4 sm:$0x11]   ;;  %v3516_v59 = vld [vmem:[%s3459_s30 + $0x54] sm:$0xff]  }
  0x1a   : > { %v485_v24 = vrot.slane %v483_v18, 1  ;;  %v504_v33 = vrot.slane %v502_v26, 1  ;;  %v488_v34 = vshrl.u32 %v3487_v27, 16  ;;  %v490_v35 = vshll.u32 %v3487_v27, 16  ;;  %v3519_v0 = vld [vmem:[%s3459_s30 + $0x48] sm:$0xff]  }
  0x1b   : > { %v474_v28 = vsel %vm462_vm2, %v469_v20, %v473_v16  ;;  %v481_v29 = vor.u32 %v480_v21, %v476_v12  ;;  %v697_v36 = vrot.slane %v3480_v19, 1  ;;  %v509_v38 = vrot.slane %v507_v30, 1  ;;  %v3273_v46 = vld [vmem:[%s3459_s30 + $0x44] ss:$0 sps:$4 sm:$0x11]   ;;  %v3530_v13 = vld [vmem:[%s3459_s30 + $0x6c] sm:$0xff]  }
  0x1c   : > { %655 = vrot.lane.b32.xlu0 %v474_v28, %s3392_s8  ;;  %738 = vrot.lane.b32.xlu1 %v693_v23, %s3391_s7  ;;  %v495_v39 = vshll.u32 %v3271_v31, 16  ;;  %v698_v40 = vrot.slane %v3269_v22, 1  ;;  %v505_v42 = vor.u32 %v504_v33, %v500_v25  ;;  %v492_v43 = vrot.slane %v490_v35, 1  ;;  %v3275_v55 = vld [vmem:[%s3459_s30 + $0x38] ss:$0 sps:$4 sm:$0x11]  }
  0x1d   : > { %v486_v37 = vsel %vm462_vm2, %v481_v29, %v485_v24  ;;  %v694_v44 = vrot.slane %v3487_v27, 1  ;;  %v524_v47 = vshrl.u32 %v3492_v32, 16  ;;  %v526_v48 = vshll.u32 %v3492_v32, 16  ;;  %v3277_v3 = vld [vmem:[%s3459_s30 + $0x5c] ss:$0 sps:$4 sm:$0x11]  }
  0x1e   : > { %v497_v45 = vrot.slane %v495_v39, 1  ;;  %v510_v49 = vsel %vm462_vm2, %v505_v42, %v509_v38  ;;  %v493_v50 = vor.u32 %v492_v43, %v488_v34  ;;  %v695_v51 = vrot.slane %v3271_v31, 1  ;;  %v3279_v15 = vld [vmem:[%s3459_s30 + $0x50] ss:$0 sps:$4 sm:$0x11]   ;;  %v3538_v21 = vld [vmem:[%s3459_s30 + $0x60] sm:$0xff]  }
  0x1f   : > { %v512_v52 = vshrl.u32 %v3501_v41, 16  ;;  %v528_v53 = vrot.slane %v526_v48, 1  ;;  %v531_v54 = vshll.u32 %v3273_v46, 16  ;;  %v514_v56 = vshll.u32 %v3501_v41, 16  ;;  %v3550_v35 = vld [vmem:[%s3459_s30 + $0x84] sm:$0xff]  }
  0x20   : > { %657 = vrot.lane.b32.xlu0 %v486_v37, %s3392_s8  ;;  %661 = vrot.lane.b32.xlu1 %v510_v49, %s3392_s8  ;;  %v498_v57 = vsel %vm462_vm2, %v493_v50, %v497_v45  ;;  %v699_v58 = vsel %vm687_vm1, %v697_v36, %v698_v40  ;;  %v519_v63 = vshll.u32 %v3275_v55, 16  ;;  %v703_v1 = vrot.slane %v3492_v32, 1  ;;  %v3281_v29 = vld [vmem:[%s3459_s30 + $0x74] ss:$0 sps:$4 sm:$0x11]  }
  0x21   : > { %v529_v60 = vor.u32 %v528_v53, %v524_v47  ;;  %v533_v61 = vrot.slane %v531_v54, 1  ;;  %v516_v62 = vrot.slane %v514_v56, 1  ;;  %v696_v5 = vsel %vm687_vm1, %v694_v44, %v695_v51  ;;  %v3283_v40 = vld [vmem:[%s3459_s30 + $0x68] ss:$0 sps:$4 sm:$0x11]   ;;  %v3566_v53 = vld [vmem:[%s3459_s30 + $0x78] sm:$0xff]  }
  0x22   : > { %v521_v7 = vrot.slane %v519_v63, 1  ;;  %v704_v8 = vrot.slane %v3273_v46, 1  ;;  %v548_v10 = vshrl.u32 %v3516_v59, 16  ;;  %v550_v11 = vshll.u32 %v3516_v59, 16 }
  0x23   : > { %v517_v6 = vor.u32 %v516_v62, %v512_v52  ;;  %v534_v9 = vsel %vm462_vm2, %v529_v60, %v533_v61  ;;  %v555_v12 = vshll.u32 %v3277_v3, 16  ;;  %v700_v14 = vrot.slane %v3501_v41, 1  ;;  %v3560_v49 = vld [vmem:[%s3459_s30 + $0x8c] ss:$0 sps:$4 sm:$0x11]  }
  0x24   : > { %659 = vrot.lane.b32.xlu0 %v498_v57, %s3392_s8  ;;  %742 = vrot.lane.b32.xlu1 %v699_v58, %s3391_s7  ;;  %v538_v16 = vshll.u32 %v3519_v0, 16  ;;  %v701_v17 = vrot.slane %v3275_v55, 1  ;;  %v552_v18 = vrot.slane %v550_v11, 1  ;;  %v536_v20 = vshrl.u32 %v3519_v0, 16 }
  0x25   : > { %v522_v22 = vsel %vm462_vm2, %v517_v6, %v521_v7  ;;  %v557_v23 = vrot.slane %v555_v12, 1  ;;  %v543_v25 = vshll.u32 %v3279_v15, 16  ;;  %v705_v26 = vsel %vm687_vm1, %v703_v1, %v704_v8  ;;  %v3581_v8 = vld [vmem:[%s3459_s30 + $0x9c] sm:$0xff]  }
  0x26   : > { %v540_v24 = vrot.slane %v538_v16, 1  ;;  %v553_v28 = vor.u32 %v552_v18, %v548_v10  ;;  %v574_v30 = vshll.u32 %v3530_v13, 16  ;;  %v702_v31 = vsel %vm687_vm1, %v700_v14, %v701_v17  ;;  %v3585_v10 = vld [vmem:[%s3459_s30 + $0xa4] ss:$0 sps:$4 sm:$0x11]  }
  0x27   : > { %v709_v33 = vrot.slane %v3516_v59, 1  ;;  %v562_v34 = vshll.u32 %v3538_v21, 16  ;;  %v545_v37 = vrot.slane %v543_v25, 1  ;;  %v710_v38 = vrot.slane %v3277_v3, 1 }
  0x28   : > { %740 = vrot.lane.b32.xlu0 %v696_v5, %s3391_s7  ;;  %665 = vrot.lane.b32.xlu1 %v534_v9, %s3392_s8  ;;  %v541_v36 = vor.u32 %v540_v24, %v536_v20  ;;  %v572_v39 = vshrl.u32 %v3530_v13, 16  ;;  %v558_v42 = vsel %vm462_vm2, %v553_v28, %v557_v23  ;;  %v576_v43 = vrot.slane %v574_v30, 1  ;;  %v3576_v3 = vld [vmem:[%s3459_s30 + $0x80] ss:$0 sps:$4 sm:$0x11]  }
  0x29   : > { %v579_v44 = vshll.u32 %v3281_v29, 16  ;;  %v706_v45 = vrot.slane %v3519_v0, 1  ;;  %v560_v46 = vshrl.u32 %v3538_v21, 16  ;;  %v564_v47 = vrot.slane %v562_v34, 1 }
  0x2a   : > { %v567_v48 = vshll.u32 %v3283_v40, 16  ;;  %v598_v50 = vshll.u32 %v3550_v35, 16  ;;  %v546_v51 = vsel %vm462_vm2, %v541_v36, %v545_v37  ;;  %v707_v52 = vrot.slane %v3279_v15, 1  ;;  %v3591_v15 = vld [vmem:[%s3459_s30 + $0x90] sm:$0xff]  }
  0x2b   : > { %v711_v54 = vsel %vm687_vm1, %v709_v33, %v710_v38  ;;  %v577_v55 = vor.u32 %v576_v43, %v572_v39  ;;  %v581_v56 = vrot.slane %v579_v44, 1  ;;  %v715_v57 = vrot.slane %v3530_v13, 1  ;;  %v3594_v16 = vld [vmem:[%s3459_s30 + $0x98] ss:$0 sps:$4 sm:$0x11]  }
  0x2c   : > { %663 = vrot.lane.b32.xlu0 %v522_v22, %s3392_s8  ;;  %746 = vrot.lane.b32.xlu1 %v705_v26, %s3391_s7  ;;  %v596_v58 = vshrl.u32 %v3550_v35, 16  ;;  %v565_v60 = vor.u32 %v564_v47, %v560_v46  ;;  %v569_v61 = vrot.slane %v567_v48, 1  ;;  %v600_v62 = vrot.slane %v598_v50, 1  ;;  %v3622_v47 = vld [vmem:[%s3459_s30 + $0xa8] sm:$0xff]  }
  0x2d   : > { %v603_v63 = vshll.u32 %v3560_v49, 16  ;;  %v708_v1 = vsel %vm687_vm1, %v706_v45, %v707_v52  ;;  %v586_v5 = vshll.u32 %v3566_v53, 16  ;;  %v582_v6 = vsel %vm462_vm2, %v577_v55, %v581_v56  ;;  %v3629_v52 = vld [vmem:[%s3459_s30 + $0xbc] ss:$0 sps:$4 sm:$0x11]  }
  0x2e   : > { %v716_v7 = vrot.slane %v3281_v29, 1  ;;  %v712_v9 = vrot.slane %v3538_v21, 1  ;;  %v570_v11 = vsel %vm462_vm2, %v565_v60, %v569_v61  ;;  %v713_v12 = vrot.slane %v3283_v40, 1 }
  0x2f   : > { %v584_v14 = vshrl.u32 %v3566_v53, 16  ;;  %v601_v17 = vor.u32 %v600_v62, %v596_v58  ;;  %v605_v18 = vrot.slane %v603_v63, 1  ;;  %v588_v20 = vrot.slane %v586_v5, 1  ;;  %v3300_v5 = vld [vmem:[%s5083_s2 + $0x8] sm:$0x3f]  }
  0x30   : > { %744 = vrot.lane.b32.xlu0 %v702_v31, %s3391_s7  ;;  %669 = vrot.lane.b32.xlu1 %v558_v42, %s3392_s8  ;;  %v591_v22 = vshll.u32 %v3576_v3, 16  ;;  %v717_v23 = vsel %vm687_vm1, %v715_v57, %v716_v7  ;;  %v721_v24 = vrot.slane %v3550_v35, 1  ;;  %v722_v25 = vrot.slane %v3560_v49, 1  ;;  %v3606_v31 = vld [vmem:[%s3459_s30 + $0xb4] sm:$0xff]   ;;  %v3616_v42 = vld [vmem:[%s3459_s30 + $0xc0] sm:$0xff]  }
  0x31   : > { %v622_v26 = vshll.u32 %v3581_v8, 16  ;;  %v718_v28 = vrot.slane %v3566_v53, 1  ;;  %v719_v29 = vrot.slane %v3576_v3, 1  ;;  %v627_v30 = vshll.u32 %v3585_v10, 16  ;;  %v3625_v49 = vld [vmem:[%s3459_s30 + $0xcc] sm:$0xff]   ;;  %3229 = vmatprep.subr.msk.bf16.mxu1 %vm908_vm0, %v3300_v5 }
  0x32   : > { %v714_v33 = vsel %vm687_vm1, %v712_v9, %v713_v12  ;;  %v610_v34 = vshll.u32 %v3591_v15, 16  ;;  %v615_v36 = vshll.u32 %v3594_v16, 16  ;;  %v606_v37 = vsel %vm462_vm2, %v601_v17, %v605_v18  ;;  %v3298_v57 = vld [vmem:[%s3459_s30 + $0xc8] ss:$0 sps:$4 sm:$0x11]  }
  0x33   : > { %v589_v38 = vor.u32 %v588_v20, %v584_v14  ;;  %v593_v39 = vrot.slane %v591_v22, 1  ;;  %v620_v40 = vshrl.u32 %v3581_v8, 16  ;;  %v624_v43 = vrot.slane %v622_v26, 1  ;;  %v3299_v3 = vld [vmem:[%s5083_s2 + $0x10] sm:$0x3f]  }
  0x34   : > { %667 = vrot.lane.b32.xlu0 %v546_v51, %s3392_s8  ;;  %750 = vrot.lane.b32.xlu1 %v711_v54, %s3391_s7  ;;  %v608_v44 = vshrl.u32 %v3591_v15, 16  ;;  %v727_v45 = vrot.slane %v3581_v8, 1  ;;  %v728_v46 = vrot.slane %v3585_v10, 1  ;;  %v629_v48 = vrot.slane %v627_v30, 1 }
  0x35   : > { %v612_v50 = vrot.slane %v610_v34, 1  ;;  %v617_v51 = vrot.slane %v615_v36, 1  ;;  %v644_v54 = vshrl.u32 %v3606_v31, 16  ;;  %v646_v55 = vshll.u32 %v3606_v31, 16  ;;  %3231 = vmatprep.subr.msk.bf16.mxu0 %vm908_vm0, %v3299_v3 }
  0x36   : > { %v594_v56 = vsel %vm462_vm2, %v589_v38, %v593_v39  ;;  %v845_v58 = vshrl.u32 %v3616_v42, 16  ;;  %v847_v60 = vshll.u32 %v3616_v42, 16  ;;  %v858_v61 = vrot.slane %v3616_v42, 1  ;;  %v3295_v7 = vld [vmem:[%s3459_s30 + $0xb0] ss:$0 sps:$4 sm:$0x11]  }
  0x37   : > { %v723_v62 = vsel %vm687_vm1, %v721_v24, %v722_v25  ;;  %v625_v63 = vor.u32 %v624_v43, %v620_v40  ;;  %v852_v10 = vshll.u32 %v3298_v57, 16  ;;  %v1255_v12 = vshll.u32 %v3625_v49, 16  ;;  %v3302_v25 = vld [vmem:[%s3459_s30 + $0xd4] ss:$0 sps:$4 sm:$0x11]  }
  0x38   : > { %748 = vrot.lane.b32.xlu0 %v708_v1, %s3391_s7  ;;  %673 = vrot.lane.b32.xlu1 %v582_v6, %s3392_s8  ;;  %v634_v1 = vshll.u32 %v3622_v47, 16  ;;  %v1253_v6 = vshrl.u32 %v3625_v49, 16  ;;  %v849_v9 = vrot.slane %v847_v60, 1  ;;  %v720_v14 = vsel %vm687_vm1, %v718_v28, %v719_v29 }
  0x39   : > { %v613_v17 = vor.u32 %v612_v50, %v608_v44  ;;  %v3654_v18 = vsel %vm908_vm0, %v3299_v3, 0  ;;  %v910_v20 = vsel %vm908_vm0, %v3300_v5, 0  ;;  %v1257_v26 = vrot.slane %v1255_v12, 1 }
  0x3a   : > { %v850_v22 = vor.u32 %v849_v9, %v845_v58  ;;  %v630_v28 = vsel %vm462_vm2, %v625_v63, %v629_v48  ;;  %v648_v29 = vrot.slane %v646_v55, 1  ;;  %v651_v30 = vshll.u32 %v3629_v52, 16  ;;  %3030 = vmatpush3.bf16.msra.mxu1 %v910_v20 }
  0x3b   : > { %v1258_v36 = vor.u32 %v1257_v26, %v1253_v6  ;;  %v1267_v38 = vrot.slane %v3302_v25, 1  ;;  %v618_v39 = vsel %vm462_vm2, %v613_v17, %v617_v51  ;;  %v724_v40 = vrot.slane %v3591_v15, 1 }
  0x3c   : > { %671 = vrot.lane.b32.xlu0 %v570_v11, %s3392_s8  ;;  %754 = vrot.lane.b32.xlu1 %v717_v23, %s3391_s7  ;;  %v859_v11 = vrot.slane %v3298_v57, 1  ;;  %v854_v23 = vrot.slane %v852_v10, 1  ;;  %v725_v43 = vrot.slane %v3594_v16, 1  ;;  %v632_v44 = vshrl.u32 %v3622_v47, 16 }
  0x3d   : > { %v636_v48 = vrot.slane %v634_v1, 1  ;;  %v639_v50 = vshll.u32 %v3295_v7, 16  ;;  %v729_v57 = vsel %vm687_vm1, %v727_v45, %v728_v46  ;;  %v649_v58 = vor.u32 %v648_v29, %v644_v54 }
  0x3e   : > { %v860_v24 = vsel %vm687_vm1, %v858_v61, %v859_v11  ;;  %v855_v34 = vsel %vm462_vm2, %v850_v22, %v854_v23  ;;  %v653_v60 = vrot.slane %v651_v30, 1  ;;  %v726_v16 = vsel %vm687_vm1, %v724_v40, %v725_v43 }
  0x3f   : > { %v637_v51 = vor.u32 %v636_v48, %v632_v44  ;;  %v733_v1 = vrot.slane %v3606_v31, 1  ;;  %v734_v3 = vrot.slane %v3629_v52, 1  ;;  %v730_v46 = vrot.slane %v3622_v47, 1 }
  0x40   : > { %752 = vrot.lane.b32.xlu0 %v714_v33, %s3391_s7  ;;  %677 = vrot.lane.b32.xlu1 %v606_v37, %s3392_s8  ;;  %v1266_v33 = vrot.slane %v3625_v49, 1  ;;  %v1260_v37 = vshll.u32 %v3302_v25, 16  ;;  %v654_v63 = vsel %vm462_vm2, %v649_v58, %v653_v60  ;;  %v731_v54 = vrot.slane %v3295_v7, 1 }
  0x41   : > { %v735_v5 = vsel %vm687_vm1, %v733_v1, %v734_v3 }
  0x42   : > { %v1262_v55 = vrot.slane %v1260_v37, 1  ;;  %v732_v6 = vsel %vm687_vm1, %v730_v46, %v731_v54 }
  0x44   : > { %675 = vrot.lane.b32.xlu0 %v594_v56, %s3392_s8  ;;  %758 = vrot.lane.b32.xlu1 %v723_v62, %s3391_s7  ;;  %v1268_v56 = vsel %vm687_vm1, %v1266_v33, %v1267_v38  ;;  %v1263_v61 = vsel %vm462_vm2, %v1258_v36, %v1262_v55  ;;  %v641_v62 = vrot.slane %v639_v50, 1 }
  0x46   : > { %v642_v45 = vsel %vm462_vm2, %v637_v51, %v641_v62 }
  0x48   : > { %756 = vrot.lane.b32.xlu0 %v720_v14, %s3391_s7  ;;  %681 = vrot.lane.b32.xlu1 %v630_v28, %s3392_s8 }
  0x4c   : > { %679 = vrot.lane.b32.xlu0 %v618_v39, %s3392_s8  ;;  %762 = vrot.lane.b32.xlu1 %v729_v57, %s3391_s7 }
  0x50   : > { %760 = vrot.lane.b32.xlu0 %v726_v16, %s3391_s7  ;;  %685 = vrot.lane.b32.xlu1 %v654_v63, %s3392_s8 }
  0x54   : > { %683 = vrot.lane.b32.xlu0 %v642_v45, %s3392_s8  ;;  %766 = vrot.lane.b32.xlu1 %v735_v5, %s3391_s7 }
  0x58   : > { %764 = vrot.lane.b32.xlu0 %v732_v6, %s3391_s7  ;;  %861 = vrot.lane.b32.xlu1 %v860_v24, %s3391_s7 }
  0x5c   : > { %856 = vrot.lane.b32.xlu0 %v855_v34, %s3392_s8  ;;  %1269 = vrot.lane.b32.xlu1 %v1268_v56, %s3391_s7 }
  0x60   : > { %1264 = vrot.lane.b32.xlu0 %v1263_v61, %s3392_s8 }
  0x8a   : > { %v737_v52 = vpop.permute.xlu1 %736 }
  0x8e   : > { %v656_v7 = vpop.permute.xlu0 %655  ;;  %v739_v9 = vpop.permute.xlu1 %738 }
  0x8f   : > { %v770_v10 = vsel %vm768_vm3, %v3464_v2, %v656_v7 }
  0x90   : > { %v803_v11 = vsel %vm801_vm4, %v770_v10, %v737_v52 }
  0x91   : > { %3065 = vmatprep.mubr.msk.bf16.mxu0 %vm875_vm5, %v803_v11 }
  0x92   : > { %v658_v12 = vpop.permute.xlu0 %657  ;;  %v662_v17 = vpop.permute.xlu1 %661 }
  0x93   : > { %v772_v14 = vsel %vm768_vm3, %v3468_v4, %v658_v12  ;;  %v776_v2 = vsel %vm768_vm3, %v3480_v19, %v662_v17 }
  0x94   : > { %v805_v20 = vsel %vm801_vm4, %v772_v14, %v739_v9 }
  0x95   : > { %3031 = vmatprep.mubr.msk.bf16.mxu1 %vm875_vm5, %v805_v20  ;;  %3066 = vmatmul.mubr.msk.bf16.vlgmr.msra.gmra.mrb[0].mxu0 %vm875_vm5, %v805_v20 }
  0x96   : > { %3098 = vmatpush3.bf16.msra.mxu0 %v3654_v18  ;;  %v660_v22 = vpop.permute.xlu0 %659  ;;  %v743_v23 = vpop.permute.xlu1 %742 }
  0x97   : > { %v774_v24 = vsel %vm768_vm3, %v3487_v27, %v660_v22  ;;  %v3711_v28 = vsel %vm801_vm4, %v776_v2, %v743_v23  ;;  %v3827_v2 = vld [vmem:[%s5082_s1] sm:$0xff] }
  0x98   : > { %1855 = vrot.lane.b32.xlu0 %v3827_v2, %s3393_s17 }
  0x9a   : > { %v741_v25 = vpop.permute.xlu0 %740  ;;  %v666_v26 = vpop.permute.xlu1 %665 }
  0x9b   : > { %v3708_v4 = vsel %vm801_vm4, %v774_v24, %v741_v25  ;;  %v780_v18 = vsel %vm768_vm3, %v3492_v32, %v666_v26  ;;  %v3834_v24 = vld [vmem:[%s5082_s1 + $0x8] sm:$0xff]  ;;  %v3848_v25 = vld [vmem:[%s5082_s1 + $0x18] sm:$0xff] }
  0x9c   : > { %3032 = vmatmul.mubr.msk.bf16.vlgmr.msra.gmra.mrb[0].mxu1 %vm875_vm5, %v3708_v4  ;;  %3069 = vmatprep.mubr.msk.bf16.mxu0 %vm875_vm5, %v3708_v4  ;;  %v3862_v26 = vld [vmem:[%s5082_s1 + $0x28] sm:$0xff] }
  0x9d   : > { %3035 = vmatprep.mubr.msk.bf16.mxu1 %vm875_vm5, %v3711_v28  ;;  %3070 = vmatmul.mubr.msk.bf16.gmra.mrb[4].mxu0 %vm875_vm5, %v3711_v28 }
  0x9e   : > { %v664_v19 = vpop.permute.xlu0 %663  ;;  %v747_v27 = vpop.permute.xlu1 %746  ;;  %1857 = vrot.lane.b32.xlu1 %v3834_v24, %s3393_s17 }
  0x9f   : > { %v778_v29 = vsel %vm768_vm3, %v3501_v41, %v664_v19  ;;  %v3729_v36 = vsel %vm801_vm4, %v780_v18, %v747_v27  ;;  %v3876_v19 = vld [vmem:[%s5082_s1 + $0x38] sm:$0xff]  ;;  %v3883_v27 = vld [vmem:[%s5082_s1 + $0x40] sm:$0xff]  ;;  %v3890_v18 = vld [vmem:[%s5082_s1 + $0x48] sm:$0xff] }
  0xa2   : > { %v745_v30 = vpop.permute.xlu0 %744  ;;  %v670_v34 = vpop.permute.xlu1 %669  ;;  %1861 = vrot.lane.b32.xlu1 %v3848_v25, %s3393_s17 }
  0xa3   : > { %v3726_v33 = vsel %vm801_vm4, %v778_v29, %v745_v30  ;;  %v784_v37 = vsel %vm768_vm3, %v3516_v59, %v670_v34  ;;  %v3897_v29 = vld [vmem:[%s5082_s1 + $0x50] sm:$0xff]  ;;  %v3904_v30 = vld [vmem:[%s5082_s1 + $0x58] sm:$0xff]  ;;  %v3916_v34 = vld [vmem:[%s5082_s1 + $0x68] sm:$0xff] }
  0xa4   : > { %3036 = vmatmul.mubr.msk.bf16.gmra.mrb[4].mxu1 %vm875_vm5, %v3726_v33  ;;  %3073 = vmatprep.mubr.msk.bf16.mxu0 %vm875_vm5, %v3726_v33 }
  0xa5   : > { %3039 = vmatprep.mubr.msk.bf16.mxu1 %vm875_vm5, %v3729_v36  ;;  %3074 = vmatmul.mubr.msk.bf16.gmra.mrb[8].mxu0 %vm875_vm5, %v3729_v36 }
  0xa6   : > { %v668_v32 = vpop.permute.xlu0 %667  ;;  %v751_v41 = vpop.permute.xlu1 %750  ;;  %1865 = vrot.lane.b32.xlu1 %v3862_v26, %s3393_s17 }
  0xa7   : > { %v782_v38 = vsel %vm768_vm3, %v3519_v0, %v668_v32  ;;  %v817_v44 = vsel %vm801_vm4, %v784_v37, %v751_v41  ;;  %v3925_v32 = vld [vmem:[%s5082_s1 + $0x70] sm:$0xff] }
  0xaa   : > { %v749_v39 = vpop.permute.xlu0 %748  ;;  %v674_v43 = vpop.permute.xlu1 %673  ;;  %1869 = vrot.lane.b32.xlu1 %v3876_v19, %s3393_s17 }
  0xab   : > { %v3744_v40 = vsel %vm801_vm4, %v782_v38, %v749_v39  ;;  %v788_v0 = vsel %vm768_vm3, %v3530_v13, %v674_v43  ;;  %v3936_v38 = vld [vmem:[%s5082_s1 + $0x78] sm:$0xff]  ;;  %v3952_v43 = vld [vmem:[%s5082_s1 + $0x88] sm:$0xff] }
  0xac   : > { %3040 = vmatmul.mubr.msk.bf16.gmra.mrb[8].mxu1 %vm875_vm5, %v3744_v40  ;;  %3077 = vmatprep.mubr.msk.bf16.mxu0 %vm875_vm5, %v3744_v40 }
  0xad   : > { %3043 = vmatprep.mubr.msk.bf16.mxu1 %vm875_vm5, %v817_v44  ;;  %3078 = vmatmul.mubr.msk.bf16.gmra.mrb[12].mxu0 %vm875_vm5, %v817_v44 }
  0xae   : > { %v672_v59 = vpop.permute.xlu0 %671  ;;  %v755_v48 = vpop.permute.xlu1 %754  ;;  %1873 = vrot.lane.b32.xlu1 %v3890_v18, %s3393_s17 }
  0xaf   : > { %v786_v50 = vsel %vm768_vm3, %v3538_v21, %v672_v59  ;;  %v821_v58 = vsel %vm801_vm4, %v788_v0, %v755_v48  ;;  %v3961_v59 = vld [vmem:[%s5082_s1 + $0x90] sm:$0xff] }
  0xb2   : > { %v753_v55 = vpop.permute.xlu0 %752  ;;  %v678_v57 = vpop.permute.xlu1 %677  ;;  %1877 = vrot.lane.b32.xlu1 %v3904_v30, %s3393_s17 }
  0xb3   : > { %v819_v56 = vsel %vm801_vm4, %v786_v50, %v753_v55  ;;  %v792_v13 = vsel %vm768_vm3, %v3550_v35, %v678_v57  ;;  %v3972_v50 = vld [vmem:[%s5082_s1 + $0x98] sm:$0xff]  ;;  %v3988_v57 = vld [vmem:[%s5082_s1 + $0xa8] sm:$0xff] }
  0xb4   : > { %3044 = vmatmul.mubr.msk.bf16.gmra.mrb[12].mxu1 %vm875_vm5, %v819_v56  ;;  %3081 = vmatprep.mubr.msk.bf16.mxu0 %vm875_vm5, %v819_v56 }
  0xb5   : > { %3047 = vmatprep.mubr.msk.bf16.mxu1 %vm875_vm5, %v821_v58  ;;  %3082 = vmatmul.mubr.msk.bf16.gmra.mrb[16].mxu0 %vm875_vm5, %v821_v58 }
  0xb6   : > { %v676_v60 = vpop.permute.xlu0 %675  ;;  %v759_v61 = vpop.permute.xlu1 %758  ;;  %1881 = vrot.lane.b32.xlu1 %v3916_v34, %s3393_s17 }
  0xb7   : > { %v790_v21 = vsel %vm768_vm3, %v3566_v53, %v676_v60  ;;  %v825_v63 = vsel %vm801_vm4, %v792_v13, %v759_v61  ;;  %v3997_v60 = vld [vmem:[%s5082_s1 + $0xb0] sm:$0xff] }
  0xba   : > { %v757_v16 = vpop.permute.xlu0 %756  ;;  %v682_v62 = vpop.permute.xlu1 %681  ;;  %1885 = vrot.lane.b32.xlu1 %v3936_v38, %s3393_s17 }
  0xbb   : > { %v823_v51 = vsel %vm801_vm4, %v790_v21, %v757_v16  ;;  %v796_v35 = vsel %vm768_vm3, %v3581_v8, %v682_v62  ;;  %v4008_v21 = vld [vmem:[%s5082_s1 + $0xb8] sm:$0xff]  ;;  %v4024_v62 = vld [vmem:[%s5082_s1 + $0xc8] sm:$0xff] }
  0xbc   : > { %3048 = vmatmul.mubr.msk.bf16.gmra.mrb[16].mxu1 %vm875_vm5, %v823_v51  ;;  %3085 = vmatprep.mubr.msk.bf16.mxu0 %vm875_vm5, %v823_v51 }
  0xbd   : > { %3051 = vmatprep.mubr.msk.bf16.mxu1 %vm875_vm5, %v825_v63  ;;  %3086 = vmatmul.mubr.msk.bf16.gmra.mrb[20].mxu0 %vm875_vm5, %v825_v63 }
  0xbe   : > { %v680_v1 = vpop.permute.xlu0 %679  ;;  %v763_v3 = vpop.permute.xlu1 %762  ;;  %1889 = vrot.lane.b32.xlu1 %v3952_v43, %s3393_s17 }
  0xbf   : > { %v794_v53 = vsel %vm768_vm3, %v3591_v15, %v680_v1  ;;  %v829_v5 = vsel %vm801_vm4, %v796_v35, %v763_v3  ;;  %v4033_v1 = vld [vmem:[%s5082_s1 + $0xd0] sm:$0xff] }
  0xc2   : > { %v761_v45 = vpop.permute.xlu0 %760  ;;  %v686_v54 = vpop.permute.xlu1 %685  ;;  %1893 = vrot.lane.b32.xlu1 %v3972_v50, %s3393_s17 }
  0xc3   : > { %v827_v46 = vsel %vm801_vm4, %v794_v53, %v761_v45  ;;  %v800_v8 = vsel %vm768_vm3, %v3606_v31, %v686_v54  ;;  %v4044_v53 = vld [vmem:[%s5082_s1 + $0xd8] sm:$0xff]  ;;  %v4060_v54 = vld [vmem:[%s5082_s1 + $0xe8] sm:$0xff] }
  0xc4   : > { %3052 = vmatmul.mubr.msk.bf16.gmra.mrb[20].mxu1 %vm875_vm5, %v827_v46  ;;  %3089 = vmatprep.mubr.msk.bf16.mxu0 %vm875_vm5, %v827_v46 }
  0xc5   : > { %3055 = vmatprep.mubr.msk.bf16.mxu1 %vm875_vm5, %v829_v5  ;;  %3090 = vmatmul.mubr.msk.bf16.gmra.mrb[24].mxu0 %vm875_vm5, %v829_v5 }
  0xc6   : > { %v684_v6 = vpop.permute.xlu0 %683  ;;  %v767_v52 = vpop.permute.xlu1 %766  ;;  %1897 = vrot.lane.b32.xlu1 %v3988_v57, %s3393_s17 }
  0xc7   : > { %v798_v15 = vsel %vm768_vm3, %v3622_v47, %v684_v6  ;;  %v833_v10 = vsel %vm801_vm4, %v800_v8, %v767_v52  ;;  %v4069_v6 = vld [vmem:[%s5082_s1 + $0xf0] sm:$0xff] }
  0xca   : > { %v765_v7 = vpop.permute.xlu0 %764  ;;  %v862_v11 = vpop.permute.xlu1 %861  ;;  %1901 = vrot.lane.b32.xlu1 %v4008_v21, %s3393_s17 }
  0xcb   : > { %v831_v9 = vsel %vm801_vm4, %v798_v15, %v765_v7  ;;  %v4080_v15 = vld [vmem:[%s5082_s1 + $0xf8] sm:$0xff] }
  0xcc   : > { %3056 = vmatmul.mubr.msk.bf16.gmra.mrb[24].mxu1 %vm875_vm5, %v831_v9  ;;  %3093 = vmatprep.mubr.msk.bf16.mxu0 %vm875_vm5, %v831_v9 }
  0xcd   : > { %3059 = vmatprep.mubr.msk.bf16.mxu1 %vm875_vm5, %v833_v10  ;;  %3094 = vmatmul.mubr.msk.bf16.gmra.mrb[28].mxu0 %vm875_vm5, %v833_v10 }
  0xce   : > { %3099 = vmatprep.mubr.msk.bf16.mxu0 %vm875_vm5, %v3708_v4  ;;  %v857_v31 = vpop.permute.xlu0 %856  ;;  %v1270_v22 = vpop.permute.xlu1 %1269  ;;  %v3855_v4 = vld [vmem:[%s5082_s1 + $0x20] sm:$0xff]  ;;  %1905 = vrot.lane.b32.xlu1 %v4024_v62, %s3393_s17 }
  0xcf   : > { %v864_v47 = vsel %vm768_vm3, %v3616_v42, %v857_v31  ;;  %v1568_v42 = vld [vmem:[%s5085_s4] sm:$0x3] }
  0xd0   : > { %v866_v12 = vsel %vm801_vm4, %v864_v47, %v862_v11  ;;  %3232 = vmatprep.subr.msk.bf16.mxu1 %vm1624_vm6, %v1568_v42  ;;  %v1626_v14 = vsel %vm1624_vm6, %v1568_v42, 0 }
  0xd1   : > { %3132 = vmatpush3.bf16.msra.mxu1 %v1626_v14 }
  0xd2   : > { %v1265_v17 = vpop.permute.xlu0 %1264  ;;  %1909 = vrot.lane.b32.xlu1 %v4044_v53, %s3393_s17 }
  0xd3   : > { %v1272_v20 = vsel %vm768_vm3, %v3625_v49, %v1265_v17  ;;  %v3841_v49 = vld [vmem:[%s5082_s1 + $0x10] sm:$0xff] }
  0xd4   : > { %3060 = vmatmul.mubr.msk.bf16.gmra.mrb[28].mxu1 %vm875_vm5, %v866_v12  ;;  %v1274_v23 = vsel %vm801_vm4, %v1272_v20, %v1270_v22  ;;  %1859 = vrot.lane.b32.xlu0 %v3841_v49, %s3393_s17  ;;  %v4127_v22 = vld [vmem:[%s5084_s3] ss:$0 sm:$0xff] }
  0xd5   : > { %3100 = vmatmul.mubr.msk.bf16.vlgmr.msra.gmra.mrb[0].mxu0 %vm875_vm5, %v3711_v28  ;;  %v3869_v28 = vld [vmem:[%s5082_s1 + $0x30] sm:$0xff] }
  0xd6   : > { %3103 = vmatprep.mubr.msk.bf16.mxu0 %vm875_vm5, %v3726_v33  ;;  %v3911_v33 = vld [vmem:[%s5082_s1 + $0x60] sm:$0xff]  ;;  %1913 = vrot.lane.b32.xlu1 %v4060_v54, %s3393_s17 }
  0xd8   : > { %1863 = vrot.lane.b32.xlu0 %v3855_v4, %s3393_s17 }
  0xda   : > { %1917 = vrot.lane.b32.xlu1 %v4080_v15, %s3393_s17 }
  0xdc   : > { %1867 = vrot.lane.b32.xlu0 %v3869_v28, %s3393_s17 }
  0xdd   : > { %3104 = vmatmul.mubr.msk.bf16.gmra.mrb[4].mxu0 %vm875_vm5, %v3729_v36 }
  0xde   : > { %3107 = vmatprep.mubr.msk.bf16.mxu0 %vm875_vm5, %v3744_v40  ;;  %v3945_v40 = vld [vmem:[%s5082_s1 + $0x80] sm:$0xff]  ;;  %1985 = vrot.lane.b32.xlu1 %v3834_v24, %s3394_s27 }
  0xe0   : > { %1871 = vrot.lane.b32.xlu0 %v3883_v27, %s3393_s17 }
  0xe2   : > { %1989 = vrot.lane.b32.xlu1 %v3848_v25, %s3394_s27 }
  0xe4   : > { %1875 = vrot.lane.b32.xlu0 %v3897_v29, %s3393_s17 }
  0xe5   : > { %3108 = vmatmul.mubr.msk.bf16.gmra.mrb[8].mxu0 %vm875_vm5, %v817_v44 }
  0xe6   : > { %3111 = vmatprep.mubr.msk.bf16.mxu0 %vm875_vm5, %v819_v56  ;;  %v3981_v56 = vld [vmem:[%s5082_s1 + $0xa0] sm:$0xff]  ;;  %1993 = vrot.lane.b32.xlu1 %v3862_v26, %s3394_s27 }
  0xe8   : > { %1879 = vrot.lane.b32.xlu0 %v3911_v33, %s3393_s17 }
  0xea   : > { %1997 = vrot.lane.b32.xlu1 %v3876_v19, %s3394_s27 }
  0xec   : > { %1883 = vrot.lane.b32.xlu0 %v3925_v32, %s3393_s17 }
  0xed   : > { %3112 = vmatmul.mubr.msk.bf16.gmra.mrb[12].mxu0 %vm875_vm5, %v821_v58 }
  0xee   : > { %3115 = vmatprep.mubr.msk.bf16.mxu0 %vm875_vm5, %v823_v51  ;;  %v4017_v51 = vld [vmem:[%s5082_s1 + $0xc0] sm:$0xff]  ;;  %2001 = vrot.lane.b32.xlu1 %v3890_v18, %s3394_s27 }
  0xf0   : > { %1887 = vrot.lane.b32.xlu0 %v3945_v40, %s3393_s17 }
  0xf2   : > { %2005 = vrot.lane.b32.xlu1 %v3904_v30, %s3394_s27 }
  0xf4   : > { %1891 = vrot.lane.b32.xlu0 %v3961_v59, %s3393_s17 }
  0xf5   : > { %3116 = vmatmul.mubr.msk.bf16.gmra.mrb[16].mxu0 %vm875_vm5, %v825_v63 }
  0xf6   : > { %3119 = vmatprep.mubr.msk.bf16.mxu0 %vm875_vm5, %v827_v46  ;;  %v4053_v46 = vld [vmem:[%s5082_s1 + $0xe0] sm:$0xff]  ;;  %2009 = vrot.lane.b32.xlu1 %v3916_v34, %s3394_s27 }
  0xf8   : > { %1895 = vrot.lane.b32.xlu0 %v3981_v56, %s3393_s17 }
  0xfa   : > { %2013 = vrot.lane.b32.xlu1 %v3936_v38, %s3394_s27 }
  0xfc   : > { %1899 = vrot.lane.b32.xlu0 %v3997_v60, %s3393_s17 }
  0xfd   : > { %3120 = vmatmul.mubr.msk.bf16.gmra.mrb[20].mxu0 %vm875_vm5, %v829_v5 }
  0xfe   : > { %3123 = vmatprep.mubr.msk.bf16.mxu0 %vm875_vm5, %v831_v9  ;;  %2017 = vrot.lane.b32.xlu1 %v3952_v43, %s3394_s27 }
 0x100   : > { %1903 = vrot.lane.b32.xlu0 %v4017_v51, %s3393_s17 }
 0x102   : > { %2021 = vrot.lane.b32.xlu1 %v3972_v50, %s3394_s27 }
 0x104   : > { %1907 = vrot.lane.b32.xlu0 %v4033_v1, %s3393_s17 }
 0x105   : > { %3124 = vmatmul.mubr.msk.bf16.gmra.mrb[24].mxu0 %vm875_vm5, %v833_v10 }
 0x106   : > { %3127 = vmatprep.mubr.msk.bf16.mxu0 %vm875_vm5, %v866_v12  ;;  %2025 = vrot.lane.b32.xlu1 %v3988_v57, %s3394_s27 }
 0x108   : > { %1911 = vrot.lane.b32.xlu0 %v4053_v46, %s3393_s17 }
 0x10a   : > { %2029 = vrot.lane.b32.xlu1 %v4008_v21, %s3394_s27 }
 0x10c   : > { %1915 = vrot.lane.b32.xlu0 %v4069_v6, %s3393_s17 }
 0x10d   : > { %3128 = vmatmul.mubr.msk.bf16.gmra.mrb[28].mxu0 %vm875_vm5, %v1274_v23 }
 0x10e   : > { %2033 = vrot.lane.b32.xlu1 %v4024_v62, %s3394_s27 }
 0x110   : > { %1983 = vrot.lane.b32.xlu0 %v3827_v2, %s3394_s27 }
 0x112   : > { %2037 = vrot.lane.b32.xlu1 %v4044_v53, %s3394_s27 }
 0x114   : > { %1987 = vrot.lane.b32.xlu0 %v3841_v49, %s3394_s27 }
 0x116   : > { %2041 = vrot.lane.b32.xlu1 %v4060_v54, %s3394_s27 }
 0x118   : > { %1991 = vrot.lane.b32.xlu0 %v3855_v4, %s3394_s27 }
 0x11a   : > { %2045 = vrot.lane.b32.xlu1 %v4080_v15, %s3394_s27 }
 0x11c   : > { %1995 = vrot.lane.b32.xlu0 %v3869_v28, %s3394_s27 }
 0x120   : > { %1999 = vrot.lane.b32.xlu0 %v3883_v27, %s3394_s27 }
 0x124   : > { %2003 = vrot.lane.b32.xlu0 %v3897_v29, %s3394_s27 }
 0x128   : > { %2007 = vrot.lane.b32.xlu0 %v3911_v33, %s3394_s27 }
 0x12c   : > { %2011 = vrot.lane.b32.xlu0 %v3925_v32, %s3394_s27 }
 0x130   : > { %2015 = vrot.lane.b32.xlu0 %v3945_v40, %s3394_s27 }
 0x134   : > { %2019 = vrot.lane.b32.xlu0 %v3961_v59, %s3394_s27 }
 0x138   : > { %2023 = vrot.lane.b32.xlu0 %v3981_v56, %s3394_s27 }
 0x13c   : > { %2027 = vrot.lane.b32.xlu0 %v3997_v60, %s3394_s27 }
 0x140   : > { %2031 = vrot.lane.b32.xlu0 %v4017_v51, %s3394_s27 }
 0x144   : > { %2035 = vrot.lane.b32.xlu0 %v4033_v1, %s3394_s27 }
 0x148   : > { %2039 = vrot.lane.b32.xlu0 %v4053_v46, %s3394_s27 }
 0x14c   : > { %2043 = vrot.lane.b32.xlu0 %v4069_v6, %s3394_s27 }
 0x16f   : > { %v3920_v36 = vpop.f32.mrb[0].mxu1 }
 0x170   : > { %v3927_v41 = vpop.f32.mrb[1].mxu1 }
 0x171   : > { %v3931_v37 = vpop.f32.mrb[2].mxu1 }
 0x172   : > { %v3938_v39 = vpop.f32.mrb[3].mxu1 }
 0x177   : > { %v3956_v44 = vpop.f32.mrb[4].mxu1 }
 0x178   : > { %v3963_v48 = vpop.f32.mrb[5].mxu1 }
 0x179   : > { %v3967_v0 = vpop.f32.mrb[6].mxu1 }
 0x17a   : > { %v3974_v55 = vpop.f32.mrb[7].mxu1 }
 0x17f   : > { %v3992_v58 = vpop.f32.mrb[8].mxu1 }
 0x180   : > { %v3999_v61 = vpop.f32.mrb[9].mxu1 }
 0x181   : > { %v4003_v13 = vpop.f32.mrb[10].mxu1 }
 0x182   : > { %v4010_v16 = vpop.f32.mrb[11].mxu1 }
 0x187   : > { %v4028_v63 = vpop.f32.mrb[12].mxu1 }
 0x188   : > { %v4035_v3 = vpop.f32.mrb[13].mxu1 }
 0x189   : > { %v4039_v35 = vpop.f32.mrb[14].mxu1 }
 0x18a   : > { %v4046_v45 = vpop.f32.mrb[15].mxu1 }
 0x18f   : > { %v4064_v5 = vpop.f32.mrb[16].mxu1 }
 0x190   : > { %v4071_v8 = vpop.f32.mrb[17].mxu1 }
 0x191   : > { %v4075_v52 = vpop.f32.mrb[18].mxu1 }
 0x192   : > { %v4082_v7 = vpop.f32.mrb[19].mxu1 }
 0x197   : > { %v4090_v9 = vpop.f32.mrb[20].mxu1 }
 0x198   : > { %v4092_v10 = vpop.f32.mrb[21].mxu1 }
 0x199   : > { %v4096_v31 = vpop.f32.mrb[22].mxu1 }
 0x19a   : > { %v4098_v11 = vpop.f32.mrb[23].mxu1 }
 0x19f   : > { %v4106_v47 = vpop.f32.mrb[24].mxu1 }
 0x1a0   : > { %v4108_v12 = vpop.f32.mrb[25].mxu1 }
 0x1a1   : > { %v4112_v42 = vpop.f32.mrb[26].mxu1 }
 0x1a2   : > { %v4114_v14 = vpop.f32.mrb[27].mxu1 }
 0x1a7   : > { %v4122_v17 = vpop.f32.mrb[28].mxu1 }
 0x1a8   : > { %v3101_v20 = vpop.f32.mrb[0].mxu0  ;;  %v4129_v23 = vpop.f32.mrb[29].mxu1 }
 0x1a9   : > { %v3165_v2 = vadd.f32 %v3101_v20, %v3920_v36  ;;  %v1322_v24 = vpop.f32.mrb[1].mxu0  ;;  %v4134_v49 = vpop.f32.mrb[30].mxu1 }
 0x1aa   : > { %v3166_v25 = vadd.f32 %v1322_v24, %v3927_v41  ;;  %v3102_v4 = vpop.f32.mrb[2].mxu0  ;;  %v4137_v26 = vpop.f32.mrb[31].mxu1 }
 0x1ab   : > { %5114 = vst [vmem:[#allocation2_spill] sm:$0xff] %v4137_v26  ;;  %v1490_v28 = vadd.f32 %v3165_v2, %v4127_v22  ;;  %v3167_v19 = vadd.f32 %v3102_v4, %v3931_v37  ;;  %v1325_v27 = vpop.f32.mrb[3].mxu0 }
 0x1ac   : > { %v1488_v18 = vadd.f32 %v3166_v25, %v4127_v22  ;;  %v3168_v36 = vadd.f32 %v1325_v27, %v3938_v39 }
 0x1ad   : > { %v1491_v41 = vadd.f32 %v3167_v19, %v4127_v22  ;;  %v1522_v29 = vmax.f32 %v1490_v28, 0.0 }
 0x1ae   : > { %v1489_v20 = vadd.f32 %v3168_v36, %v4127_v22  ;;  %v1520_v2 = vmax.f32 %v1488_v18, 0.0 }
 0x1af   : > { %v1523_v24 = vmax.f32 %v1491_v41, 0.0 }
 0x1b0   : > { %v1521_v26 = vmax.f32 %v1489_v20, 0.0  ;;  %v3105_v37 = vpop.f32.mrb[4].mxu0 }
 0x1b1   : > { %v1553_v25 = vpack.c.bf16 %v1523_v24, %v1522_v29  ;;  %v3169_v39 = vadd.f32 %v3105_v37, %v3956_v44  ;;  %v1338_v4 = vpop.f32.mrb[5].mxu0 }
 0x1b2   : > { %v1552_v30 = vpack.c.bf16 %v1521_v26, %v1520_v2  ;;  %v3170_v19 = vadd.f32 %v1338_v4, %v3963_v48  ;;  %v3106_v27 = vpop.f32.mrb[6].mxu0 }
 0x1b3   : > { %v1494_v33 = vadd.f32 %v3169_v39, %v4127_v22  ;;  %v3171_v28 = vadd.f32 %v3106_v27, %v3967_v0  ;;  %v1341_v18 = vpop.f32.mrb[7].mxu0 }
 0x1b4   : > { %v1492_v36 = vadd.f32 %v3170_v19, %v4127_v22  ;;  %v3172_v34 = vadd.f32 %v1341_v18, %v3974_v55  ;;  %3133 = vmatprep.mubr.msk.bf16.mxu1 %vm768_vm3, %v1552_v30 }
 0x1b5   : > { %v1495_v44 = vadd.f32 %v3171_v28, %v4127_v22  ;;  %3134 = vmatmul.mubr.msk.bf16.vlgmr.msra.gmra.mrb[32].mxu1 %vm768_vm3, %v1553_v25  ;;  %v1526_v48 = vmax.f32 %v1494_v33, 0.0 }
 0x1b6   : > { %v1493_v32 = vadd.f32 %v3172_v34, %v4127_v22  ;;  %v1524_v26 = vmax.f32 %v1492_v36, 0.0 }
 0x1b7   : > { %v1527_v0 = vmax.f32 %v1495_v44, 0.0 }
 0x1b8   : > { %v1525_v41 = vmax.f32 %v1493_v32, 0.0  ;;  %v3109_v20 = vpop.f32.mrb[8].mxu0 }
 0x1b9   : > { %v1555_v55 = vpack.c.bf16 %v1527_v0, %v1526_v48  ;;  %v3173_v38 = vadd.f32 %v3109_v20, %v3992_v58  ;;  %v1354_v29 = vpop.f32.mrb[9].mxu0 }
 0x1ba   : > { %v1554_v24 = vpack.c.bf16 %v1525_v41, %v1524_v26  ;;  %v3174_v2 = vadd.f32 %v1354_v29, %v3999_v61  ;;  %v3110_v37 = vpop.f32.mrb[10].mxu0 }
 0x1bb   : > { %v1498_v40 = vadd.f32 %v3173_v38, %v4127_v22  ;;  %v3175_v25 = vadd.f32 %v3110_v37, %v4003_v13  ;;  %v1357_v39 = vpop.f32.mrb[11].mxu0 }
 0x1bc   : > { %v1496_v4 = vadd.f32 %v3174_v2, %v4127_v22  ;;  %v3176_v43 = vadd.f32 %v1357_v39, %v4010_v16  ;;  %3137 = vmatprep.mubr.msk.bf16.mxu1 %vm768_vm3, %v1554_v24 }
 0x1bd   : > { %v1499_v58 = vadd.f32 %v3175_v25, %v4127_v22  ;;  %3138 = vmatmul.mubr.msk.bf16.gmra.mrb[36].mxu1 %vm768_vm3, %v1555_v55  ;;  %v1530_v61 = vmax.f32 %v1498_v40, 0.0 }
 0x1be   : > { %v1497_v59 = vadd.f32 %v3176_v43, %v4127_v22  ;;  %v1528_v30 = vmax.f32 %v1496_v4, 0.0 }
 0x1bf   : > { %v1531_v13 = vmax.f32 %v1499_v58, 0.0 }
 0x1c0   : > { %v1529_v19 = vmax.f32 %v1497_v59, 0.0  ;;  %v3113_v27 = vpop.f32.mrb[12].mxu0 }
 0x1c1   : > { %v1557_v16 = vpack.c.bf16 %v1531_v13, %v1530_v61  ;;  %v3177_v50 = vadd.f32 %v3113_v27, %v4028_v63  ;;  %v1370_v33 = vpop.f32.mrb[13].mxu0 }
 0x1c2   : > { %v1556_v28 = vpack.c.bf16 %v1529_v19, %v1528_v30  ;;  %v3178_v18 = vadd.f32 %v1370_v33, %v4035_v3  ;;  %v3114_v36 = vpop.f32.mrb[14].mxu0 }
 0x1c3   : > { %v1502_v56 = vadd.f32 %v3177_v50, %v4127_v22  ;;  %v3179_v34 = vadd.f32 %v3114_v36, %v4039_v35  ;;  %v1373_v44 = vpop.f32.mrb[15].mxu0 }
 0x1c4   : > { %v1500_v32 = vadd.f32 %v3178_v18, %v4127_v22  ;;  %v3180_v57 = vadd.f32 %v1373_v44, %v4046_v45  ;;  %3141 = vmatprep.mubr.msk.bf16.mxu1 %vm768_vm3, %v1556_v28 }
 0x1c5   : > { %v1503_v63 = vadd.f32 %v3179_v34, %v4127_v22  ;;  %3142 = vmatmul.mubr.msk.bf16.gmra.mrb[40].mxu1 %vm768_vm3, %v1557_v16  ;;  %v1534_v3 = vmax.f32 %v1502_v56, 0.0 }
 0x1c6   : > { %v1501_v60 = vadd.f32 %v3180_v57, %v4127_v22  ;;  %v1532_v48 = vmax.f32 %v1500_v32, 0.0 }
 0x1c7   : > { %v1535_v35 = vmax.f32 %v1503_v63, 0.0 }
 0x1c8   : > { %v1533_v0 = vmax.f32 %v1501_v60, 0.0  ;;  %v3117_v26 = vpop.f32.mrb[16].mxu0 }
 0x1c9   : > { %v1559_v45 = vpack.c.bf16 %v1535_v35, %v1534_v3  ;;  %v3181_v21 = vadd.f32 %v3117_v26, %v4064_v5  ;;  %v1386_v41 = vpop.f32.mrb[17].mxu0 }
 0x1ca   : > { %v1558_v20 = vpack.c.bf16 %v1533_v0, %v1532_v48  ;;  %v3182_v55 = vadd.f32 %v1386_v41, %v4071_v8  ;;  %v3118_v38 = vpop.f32.mrb[18].mxu0 }
 0x1cb   : > { %v1506_v51 = vadd.f32 %v3181_v21, %v4127_v22  ;;  %v3183_v29 = vadd.f32 %v3118_v38, %v4075_v52  ;;  %v1389_v24 = vpop.f32.mrb[19].mxu0 }
 0x1cc   : > { %v1504_v2 = vadd.f32 %v3182_v55, %v4127_v22  ;;  %v3184_v62 = vadd.f32 %v1389_v24, %v4082_v7  ;;  %3145 = vmatprep.mubr.msk.bf16.mxu1 %vm768_vm3, %v1558_v20  ;;  %v5115_v55 = vld [vmem:[#allocation2_spill] sm:$0xff] }
 0x1cd   : > { %v1507_v5 = vadd.f32 %v3183_v29, %v4127_v22  ;;  %3146 = vmatmul.mubr.msk.bf16.gmra.mrb[44].mxu1 %vm768_vm3, %v1559_v45  ;;  %v1538_v8 = vmax.f32 %v1506_v51, 0.0 }
 0x1ce   : > { %v1505_v1 = vadd.f32 %v3184_v62, %v4127_v22  ;;  %v1536_v37 = vmax.f32 %v1504_v2, 0.0 }
 0x1cf   : > { %v1539_v52 = vmax.f32 %v1507_v5, 0.0 }
 0x1d0   : > { %v1537_v40 = vmax.f32 %v1505_v1, 0.0  ;;  %v3121_v25 = vpop.f32.mrb[20].mxu0  ;;  %v4263_v1 = vpop.permute.xlu1 %1857 }
 0x1d1   : > { %v1561_v7 = vpack.c.bf16 %v1539_v52, %v1538_v8  ;;  %v3185_v53 = vadd.f32 %v3121_v25, %v4090_v9  ;;  %v1402_v39 = vpop.f32.mrb[21].mxu0 }
 0x1d2   : > { %v1560_v4 = vpack.c.bf16 %v1537_v40, %v1536_v37  ;;  %v3186_v43 = vadd.f32 %v1402_v39, %v4092_v10  ;;  %v3122_v58 = vpop.f32.mrb[22].mxu0 }
 0x1d3   : > { %v1510_v46 = vadd.f32 %v3185_v53, %v4127_v22  ;;  %v3187_v59 = vadd.f32 %v3122_v58, %v4096_v31  ;;  %v1405_v61 = vpop.f32.mrb[23].mxu0 }
 0x1d4   : > { %v1508_v13 = vadd.f32 %v3186_v43, %v4127_v22  ;;  %v3188_v54 = vadd.f32 %v1405_v61, %v4098_v11  ;;  %3149 = vmatprep.mubr.msk.bf16.mxu1 %vm768_vm3, %v1560_v4  ;;  %v4267_v52 = vpop.permute.xlu1 %1861 }
 0x1d5   : > { %v1511_v9 = vadd.f32 %v3187_v59, %v4127_v22  ;;  %3150 = vmatmul.mubr.msk.bf16.gmra.mrb[48].mxu1 %vm768_vm3, %v1561_v7  ;;  %v1542_v10 = vmax.f32 %v1510_v46, 0.0 }
 0x1d6   : > { %v1509_v6 = vadd.f32 %v3188_v54, %v4127_v22  ;;  %v1540_v19 = vmax.f32 %v1508_v13, 0.0 }
 0x1d7   : > { %v1543_v30 = vmax.f32 %v1511_v9, 0.0 }
 0x1d8   : > { %v1541_v31 = vmax.f32 %v1509_v6, 0.0  ;;  %v3125_v27 = vpop.f32.mrb[24].mxu0 }
 0x1d9   : > { %v1563_v16 = vpack.c.bf16 %v1543_v30, %v1542_v10  ;;  %v3189_v50 = vadd.f32 %v3125_v27, %v4106_v47  ;;  %v1418_v11 = vpop.f32.mrb[25].mxu0 }
 0x1da   : > { %v1562_v33 = vpack.c.bf16 %v1541_v31, %v1540_v19  ;;  %v3190_v28 = vadd.f32 %v1418_v11, %v4108_v12  ;;  %v3126_v18 = vpop.f32.mrb[26].mxu0 }
 0x1db   : > { %v1514_v15 = vadd.f32 %v3189_v50, %v4127_v22  ;;  %v3191_v36 = vadd.f32 %v3126_v18, %v4112_v42  ;;  %v1421_v56 = vpop.f32.mrb[27].mxu0 }
 0x1dc   : > { %v1512_v34 = vadd.f32 %v3190_v28, %v4127_v22  ;;  %v3192_v44 = vadd.f32 %v1421_v56, %v4114_v14  ;;  %3153 = vmatprep.mubr.msk.bf16.mxu1 %vm768_vm3, %v1562_v33 }
 0x1dd   : > { %v1515_v32 = vadd.f32 %v3191_v36, %v4127_v22  ;;  %3154 = vmatmul.mubr.msk.bf16.gmra.mrb[52].mxu1 %vm768_vm3, %v1563_v16  ;;  %v1546_v57 = vmax.f32 %v1514_v15, 0.0 }
 0x1de   : > { %v1513_v47 = vadd.f32 %v3192_v44, %v4127_v22  ;;  %v1544_v63 = vmax.f32 %v1512_v34, 0.0 }
 0x1df   : > { %v1547_v12 = vmax.f32 %v1515_v32, 0.0 }
 0x1e0   : > { %v1545_v60 = vmax.f32 %v1513_v47, 0.0  ;;  %v3129_v3 = vpop.f32.mrb[28].mxu0  ;;  %v4341_v47 = vld [vmem:[%s5086_s5] ss:$0 sm:$0xff] }
 0x1e1   : > { %v1565_v35 = vpack.c.bf16 %v1547_v12, %v1546_v57  ;;  %v3193_v42 = vadd.f32 %v3129_v3, %v4122_v17  ;;  %v1434_v48 = vpop.f32.mrb[29].mxu0 }
 0x1e2   : > { %v1564_v0 = vpack.c.bf16 %v1545_v60, %v1544_v63  ;;  %v3194_v14 = vadd.f32 %v1434_v48, %v4129_v23  ;;  %v3130_v26 = vpop.f32.mrb[30].mxu0 }
 0x1e3   : > { %v1518_v45 = vadd.f32 %v3193_v42, %v4127_v22  ;;  %v3195_v21 = vadd.f32 %v3130_v26, %v4134_v49  ;;  %v1437_v41 = vpop.f32.mrb[31].mxu0  ;;  %v4261_v49 = vpop.permute.xlu0 %1855 }
 0x1e4   : > { %v1516_v20 = vadd.f32 %v3194_v14, %v4127_v22  ;;  %v3196_v38 = vadd.f32 %v1437_v41, %v5115_v55  ;;  %3157 = vmatprep.mubr.msk.bf16.mxu1 %vm768_vm3, %v1564_v0 }
 0x1e5   : > { %v1519_v51 = vadd.f32 %v3195_v21, %v4127_v22  ;;  %3158 = vmatmul.mubr.msk.bf16.gmra.mrb[56].mxu1 %vm768_vm3, %v1565_v35  ;;  %v1550_v29 = vmax.f32 %v1518_v45, 0.0 }
 0x1e6   : > { %v1517_v17 = vadd.f32 %v3196_v38, %v4127_v22  ;;  %v1548_v24 = vmax.f32 %v1516_v20, 0.0  ;;  %v4271_v22 = vpop.permute.xlu1 %1865 }
 0x1e7   : > { %v1551_v23 = vmax.f32 %v1519_v51, 0.0  ;;  %v4265_v8 = vpop.permute.xlu0 %1859 }
 0x1e8   : > { %v1549_v2 = vmax.f32 %v1517_v17, 0.0 }
 0x1e9   : > { %v1567_v62 = vpack.c.bf16 %v1551_v23, %v1550_v29 }
 0x1ea   : > { %v1566_v5 = vpack.c.bf16 %v1549_v2, %v1548_v24  ;;  %v4275_v25 = vpop.permute.xlu1 %1869 }
 0x1eb   : > { %v4269_v37 = vpop.permute.xlu0 %1863 }
 0x1ec   : > { %3161 = vmatprep.mubr.msk.bf16.mxu1 %vm768_vm3, %v1566_v5 }
 0x1ed   : > { %3162 = vmatmul.mubr.msk.bf16.gmra.mrb[60].mxu1 %vm768_vm3, %v1567_v62 }
 0x1ee   : > { %v4279_v53 = vpop.permute.xlu1 %1873 }
 0x1ef   : > { %v4273_v40 = vpop.permute.xlu0 %1867 }
 0x1f2   : > { %v4283_v4 = vpop.permute.xlu1 %1877 }
 0x1f3   : > { %v4277_v7 = vpop.permute.xlu0 %1871 }
 0x1f6   : > { %v4287_v58 = vpop.permute.xlu1 %1881 }
 0x1f7   : > { %v4281_v39 = vpop.permute.xlu0 %1875  ;;  %5117 = vst [vmem:[#allocation3_spill] sm:$0xff] %v4287_v58 }
 0x1fa   : > { %v4291_v59 = vpop.permute.xlu1 %1885 }
 0x1fb   : > { %v4285_v43 = vpop.permute.xlu0 %1879  ;;  %5118 = vst [vmem:[#allocation4_spill] sm:$0xff] %v4291_v59 }
 0x1fc   : > { %5116 = vst [vmem:[#allocation2_spill] sm:$0xff] %v4285_v43 }
 0x1fe   : > { %v4295_v13 = vpop.permute.xlu1 %1889 }
 0x1ff   : > { %v4289_v46 = vpop.permute.xlu0 %1883  ;;  %5120 = vst [vmem:[#allocation6_spill] sm:$0xff] %v4295_v13 }
 0x202   : > { %v4299_v9 = vpop.permute.xlu1 %1893 }
 0x203   : > { %v4293_v61 = vpop.permute.xlu0 %1887  ;;  %5122 = vst [vmem:[#allocation8_spill] sm:$0xff] %v4299_v9 }
 0x204   : > { %5119 = vst [vmem:[#allocation5_spill] sm:$0xff] %v4293_v61 }
 0x206   : > { %v4303_v10 = vpop.permute.xlu1 %1897 }
 0x207   : > { %v4297_v54 = vpop.permute.xlu0 %1891  ;;  %5124 = vst [vmem:[#allocation10_spill] sm:$0xff] %v4303_v10 }
 0x208   : > { %5121 = vst [vmem:[#allocation7_spill] sm:$0xff] %v4297_v54 }
 0x20a   : > { %v4307_v19 = vpop.permute.xlu1 %1901 }
 0x20b   : > { %v4301_v6 = vpop.permute.xlu0 %1895  ;;  %5126 = vst [vmem:[#allocation12_spill] sm:$0xff] %v4307_v19 }
 0x20c   : > { %5123 = vst [vmem:[#allocation9_spill] sm:$0xff] %v4301_v6 }
 0x20e   : > { %v4311_v27 = vpop.permute.xlu1 %1905 }
 0x20f   : > { %v4305_v30 = vpop.permute.xlu0 %1899  ;;  %5128 = vst [vmem:[#allocation14_spill] sm:$0xff] %v4311_v27 }
 0x210   : > { %5125 = vst [vmem:[#allocation11_spill] sm:$0xff] %v4305_v30 }
 0x212   : > { %v4315_v50 = vpop.permute.xlu1 %1909 }
 0x213   : > { %v4309_v31 = vpop.permute.xlu0 %1903  ;;  %5130 = vst [vmem:[#allocation16_spill] sm:$0xff] %v4315_v50 }
 0x214   : > { %5127 = vst [vmem:[#allocation13_spill] sm:$0xff] %v4309_v31 }
 0x216   : > { %v4319_v33 = vpop.permute.xlu1 %1913 }
 0x217   : > { %v4313_v16 = vpop.permute.xlu0 %1907  ;;  %5132 = vst [vmem:[#allocation18_spill] sm:$0xff] %v4319_v33 }
 0x218   : > { %5129 = vst [vmem:[#allocation15_spill] sm:$0xff] %v4313_v16 }
 0x21a   : > { %v4323_v18 = vpop.permute.xlu1 %1917 }
 0x21b   : > { %v4317_v11 = vpop.permute.xlu0 %1911  ;;  %5134 = vst [vmem:[#allocation20_spill] sm:$0xff] %v4323_v18 }
 0x21c   : > { %5131 = vst [vmem:[#allocation17_spill] sm:$0xff] %v4317_v11 }
 0x21e   : > { %v4327_v36 = vpop.permute.xlu1 %1985 }
 0x21f   : > { %v4321_v28 = vpop.permute.xlu0 %1915 }
 0x220   : > { %5133 = vst [vmem:[#allocation19_spill] sm:$0xff] %v4321_v28 }
 0x222   : > { %v4331_v34 = vpop.permute.xlu1 %1989 }
 0x223   : > { %v4325_v15 = vpop.permute.xlu0 %1983 }
 0x226   : > { %v4336_v32 = vpop.permute.xlu1 %1993 }
 0x227   : > { %v4329_v56 = vpop.permute.xlu0 %1987 }
 0x22a   : > { %v4363_v14 = vpop.permute.xlu1 %1997 }
 0x22b   : > { %v4333_v44 = vpop.permute.xlu0 %1991 }
 0x22e   : > { %v4385_v2 = vpop.permute.xlu1 %2001 }
 0x22f   : > { %v4351_v60 = vpop.permute.xlu0 %1995 }
 0x233   : > { %v4380_v51 = vpop.permute.xlu0 %1999 }
 0x288   : > { %v3135_v57 = vpop.f32.mrb[32].mxu1 }
 0x289   : > { %v4349_v12 = vadd.f32 %v3135_v57, %v4341_v47  ;;  %v1662_v63 = vpop.f32.mrb[33].mxu1 }
 0x28a   : > { %v4354_v3 = vadd.f32 %v4341_v47, %v1662_v63  ;;  %v3136_v35 = vpop.f32.mrb[34].mxu1 }
 0x28b   : > { %v2113_v42 = vmin.f32 %v4349_v12, 4.1351666  ;;  %2242 = vst.msk [vmem:[%s4346_s10 + $0x10] sm:$0xff] %vm2239_vm7, %v4349_v12  ;;  %v4361_v48 = vadd.f32 %v3136_v35, %v4341_v47  ;;  %v1665_v0 = vpop.f32.mrb[35].mxu1 }
 0x28c   : > { %v2111_v26 = vmin.f32 %v4354_v3, 4.1351666  ;;  %2240 = vst.msk [vmem:[%s4346_s10] sm:$0xff] %vm2239_vm7, %v4354_v3  ;;  %v4370_v45 = vadd.f32 %v4341_v47, %v1665_v0 }
 0x28d   : > { %v2147_v21 = vmul.f32 1.442695, %v2113_v42  ;;  %v2114_v41 = vmin.f32 %v4361_v48, 4.1351666  ;;  %2243 = vst.msk [vmem:[%s4346_s10 + $0x18] sm:$0xff] %vm2239_vm7, %v4361_v48 }
 0x28e   : > { %v2143_v20 = vmul.f32 1.442695, %v2111_v26  ;;  %v2112_v55 = vmin.f32 %v4370_v45, 4.1351666  ;;  %2241 = vst.msk [vmem:[%s4346_s10 + $0x8] sm:$0xff] %vm2239_vm7, %v4370_v45 }
 0x28f   : > { %3303 = vpow2.f32 %v2147_v21  ;;  %v2149_v38 = vmul.f32 1.442695, %v2114_v41  ;;  %v4408_v41 = vpop.permute.xlu0 %2003 }
 0x290   : > { %3305 = vpow2.f32 %v2143_v20  ;;  %v2145_v17 = vmul.f32 1.442695, %v2112_v55  ;;  %v3139_v29 = vpop.f32.mrb[36].mxu1 }
 0x291   : > { %3307 = vpow2.f32 %v2149_v38  ;;  %v4383_v23 = vadd.f32 %v3139_v29, %v4341_v47  ;;  %v1678_v24 = vpop.f32.mrb[37].mxu1 }
 0x292   : > { %v4388_v62 = vadd.f32 %v4341_v47, %v1678_v24  ;;  %v3140_v5 = vpop.f32.mrb[38].mxu1  ;;  %3309 = vpow2.f32 %v2145_v17  ;;  %v4414_v17 = vpop.permute.xlu1 %2005 }
 0x293   : > { %v2117_v57 = vmin.f32 %v4383_v23, 4.1351666  ;;  %2246 = vst.msk [vmem:[%s4346_s10 + $0x30] sm:$0xff] %vm2239_vm7, %v4383_v23  ;;  %v4395_v63 = vadd.f32 %v3140_v5, %v4341_v47  ;;  %v1681_v35 = vpop.f32.mrb[39].mxu1 }
 0x294   : > { %v2115_v42 = vmin.f32 %v4388_v62, 4.1351666  ;;  %2244 = vst.msk [vmem:[%s4346_s10 + $0x20] sm:$0xff] %vm2239_vm7, %v4388_v62  ;;  %v4402_v0 = vadd.f32 %v4341_v47, %v1681_v35 }
 0x295   : > { %v2155_v26 = vmul.f32 1.442695, %v2117_v57  ;;  %v2118_v21 = vmin.f32 %v4395_v63, 4.1351666  ;;  %2247 = vst.msk [vmem:[%s4346_s10 + $0x38] sm:$0xff] %vm2239_vm7, %v4395_v63 }
 0x296   : > { %v2151_v20 = vmul.f32 1.442695, %v2115_v42  ;;  %v2116_v55 = vmin.f32 %v4402_v0, 4.1351666  ;;  %2245 = vst.msk [vmem:[%s4346_s10 + $0x28] sm:$0xff] %vm2239_vm7, %v4402_v0 }
 0x297   : > { %3311 = vpow2.f32 %v2155_v26  ;;  %v2157_v38 = vmul.f32 1.442695, %v2118_v21 }
 0x298   : > { %3313 = vpow2.f32 %v2151_v20  ;;  %v2153_v29 = vmul.f32 1.442695, %v2116_v55  ;;  %v3143_v24 = vpop.f32.mrb[40].mxu1 }
 0x299   : > { %v3304_v5 = vpop.eup %3303  ;;  %3315 = vpow2.f32 %v2157_v38  ;;  %v4417_v57 = vadd.f32 %v3143_v24, %v4341_v47  ;;  %v1694_v35 = vpop.f32.mrb[41].mxu1 }
 0x29a   : > { %v3306_v42 = vpop.eup %3305  ;;  %v2209_v33 = vmul.f32 %v3304_v5, %v4329_v56  ;;  %v4421_v11 = vadd.f32 %v4341_v47, %v1694_v35  ;;  %v3144_v26 = vpop.f32.mrb[42].mxu1  ;;  %3317 = vpow2.f32 %v2153_v29 }
 0x29b   : > { %v3308_v21 = vpop.eup %3307  ;;  %v2121_v20 = vmin.f32 %v4417_v57, 4.1351666  ;;  %2250 = vst.msk [vmem:[%s4346_s10 + $0x50] sm:$0xff] %vm2239_vm7, %v4417_v57  ;;  %v4428_v55 = vadd.f32 %v3144_v26, %v4341_v47  ;;  %v1697_v38 = vpop.f32.mrb[43].mxu1  ;;  %v2207_v29 = vmul.f32 %v3306_v42, %v4325_v15 }
 0x29c   : > { %v4430_v24 = vpop.permute.xlu0 %2007  ;;  %v2274_v18 = vmul.f32 0.5, %v2209_v33  ;;  %v2210_v5 = vmul.f32 %v3308_v21, %v4331_v34  ;;  %v2119_v35 = vmin.f32 %v4421_v11, 4.1351666  ;;  %2248 = vst.msk [vmem:[%s4346_s10 + $0x40] sm:$0xff] %vm2239_vm7, %v4421_v11  ;;  %v3310_v28 = vpop.eup %3309  ;;  %v4443_v26 = vadd.f32 %v4341_v47, %v1697_v38 }
 0x29d   : > { %v2163_v27 = vmul.f32 1.442695, %v2121_v20  ;;  %v2122_v31 = vmin.f32 %v4428_v55, 4.1351666  ;;  %2251 = vst.msk [vmem:[%s4346_s10 + $0x58] sm:$0xff] %vm2239_vm7, %v4428_v55  ;;  %v4445_v33 = vpop.permute.xlu1 %2009  ;;  %v2272_v38 = vmul.f32 0.5, %v2207_v29  ;;  %v2208_v10 = vmul.f32 %v3310_v28, %v4327_v36 }
 0x29e   : > { %5135 = vst [vmem:[#allocation21_spill] sm:$0xff] %v4445_v33  ;;  %v2275_v21 = vmul.f32 0.5, %v2210_v5  ;;  %v2159_v50 = vmul.f32 1.442695, %v2119_v35  ;;  %2340 = vrot.lane.b32.xlu0 %v2274_v18, %s3395_s21  ;;  %v2120_v42 = vmin.f32 %v4443_v26, 4.1351666 }
 0x29f   : > { %3319 = vpow2.f32 %v2163_v27  ;;  %v2165_v16 = vmul.f32 1.442695, %v2122_v31  ;;  %2249 = vst.msk [vmem:[%s4346_s10 + $0x48] sm:$0xff] %vm2239_vm7, %v4443_v26  ;;  %v2273_v28 = vmul.f32 0.5, %v2208_v10 }
 0x2a0   : > { %3321 = vpow2.f32 %v2159_v50  ;;  %2342 = vrot.lane.b32.xlu1 %v2275_v21, %s3395_s21  ;;  %v3147_v20 = vpop.f32.mrb[44].mxu1  ;;  %v2161_v35 = vmul.f32 1.442695, %v2120_v42  ;;  %v4457_v27 = vpop.permute.xlu0 %2011 }
 0x2a1   : > { %v3312_v5 = vpop.eup %3311  ;;  %3323 = vpow2.f32 %v2165_v16  ;;  %v4455_v18 = vadd.f32 %v3147_v20, %v4341_v47  ;;  %v1710_v31 = vpop.f32.mrb[45].mxu1  ;;  %5136 = vst [vmem:[#allocation22_spill] sm:$0xff] %v4457_v27 }
 0x2a2   : > { %v3314_v6 = vpop.eup %3313  ;;  %v2213_v50 = vmul.f32 %v3312_v5, %v4351_v60  ;;  %v4461_v21 = vadd.f32 %v4341_v47, %v1710_v31  ;;  %v3148_v29 = vpop.f32.mrb[46].mxu1  ;;  %2336 = vrot.lane.b32.xlu0 %v2272_v38, %s3395_s21  ;;  %3325 = vpow2.f32 %v2161_v35 }
 0x2a3   : > { %v3316_v16 = vpop.eup %3315  ;;  %v2125_v42 = vmin.f32 %v4455_v18, 4.1351666  ;;  %2254 = vst.msk [vmem:[%s4346_s10 + $0x70] sm:$0xff] %vm2239_vm7, %v4455_v18  ;;  %v4469_v20 = vadd.f32 %v3148_v29, %v4341_v47  ;;  %v1713_v19 = vpop.f32.mrb[47].mxu1  ;;  %v2211_v61 = vmul.f32 %v3314_v6, %v4333_v44 }
 0x2a4   : > { %5137 = vst [vmem:[#allocation23_spill] sm:$0xff] %v4461_v21  ;;  %v4471_v5 = vpop.permute.xlu1 %2013  ;;  %v2278_v31 = vmul.f32 0.5, %v2213_v50  ;;  %v2214_v30 = vmul.f32 %v3316_v16, %v4363_v14  ;;  %v2123_v10 = vmin.f32 %v4461_v21, 4.1351666  ;;  %2252 = vst.msk [vmem:[%s4346_s10 + $0x60] sm:$0xff] %vm2239_vm7, %v4461_v21  ;;  %2338 = vrot.lane.b32.xlu1 %v2273_v28, %s3395_s21  ;;  %v3318_v38 = vpop.eup %3317  ;;  %v4484_v29 = vadd.f32 %v4341_v47, %v1713_v19 }
 0x2a5   : > { %5138 = vst [vmem:[#allocation24_spill] sm:$0xff] %v4471_v5  ;;  %v2171_v35 = vmul.f32 1.442695, %v2125_v42  ;;  %v2126_v13 = vmin.f32 %v4469_v20, 4.1351666  ;;  %2255 = vst.msk [vmem:[%s4346_s10 + $0x78] sm:$0xff] %vm2239_vm7, %v4469_v20  ;;  %v4492_v42 = vpop.permute.xlu0 %2015 }
 0x2a6   : > { %5139 = vst [vmem:[#allocation25_spill] sm:$0xff] %v4484_v29  ;;  %v2279_v50 = vmul.f32 0.5, %v2214_v30  ;;  %v2167_v16 = vmul.f32 1.442695, %v2123_v10  ;;  %2348 = vrot.lane.b32.xlu0 %v2278_v31, %s3395_s21  ;;  %v2124_v28 = vmin.f32 %v4484_v29, 4.1351666  ;;  %v2212_v30 = vmul.f32 %v3318_v38, %v4336_v32 }
 0x2a7   : > { %3327 = vpow2.f32 %v2171_v35  ;;  %v2173_v9 = vmul.f32 1.442695, %v2126_v13  ;;  %2253 = vst.msk [vmem:[%s4346_s10 + $0x68] sm:$0xff] %vm2239_vm7, %v4484_v29  ;;  %5140 = vst [vmem:[#allocation26_spill] sm:$0xff] %v4492_v42  ;;  %v2276_v19 = vmul.f32 0.5, %v2211_v61 }
 0x2a8   : > { %3329 = vpow2.f32 %v2167_v16  ;;  %v3151_v54 = vpop.f32.mrb[48].mxu1  ;;  %2350 = vrot.lane.b32.xlu1 %v2279_v50, %s3395_s21  ;;  %v2169_v6 = vmul.f32 1.442695, %v2124_v28  ;;  %v4499_v35 = vpop.permute.xlu1 %2017  ;;  %v2277_v38 = vmul.f32 0.5, %v2212_v30 }
 0x2a9   : > { %v3320_v31 = vpop.eup %3319  ;;  %3331 = vpow2.f32 %v2173_v9  ;;  %v4497_v13 = vadd.f32 %v3151_v54, %v4341_v47  ;;  %v1726_v10 = vpop.f32.mrb[49].mxu1 }
 0x2aa   : > { %v3322_v58 = vpop.eup %3321  ;;  %v2217_v16 = vmul.f32 %v3320_v31, %v4408_v41  ;;  %v4503_v29 = vadd.f32 %v4341_v47, %v1726_v10  ;;  %v3152_v61 = vpop.f32.mrb[50].mxu1  ;;  %2344 = vrot.lane.b32.xlu0 %v2276_v19, %s3395_s21  ;;  %3333 = vpow2.f32 %v2169_v6 }
 0x2ab   : > { %5141 = vst [vmem:[#allocation27_spill] sm:$0xff] %v4497_v13  ;;  %v3324_v9 = vpop.eup %3323  ;;  %v2129_v54 = vmin.f32 %v4497_v13, 4.1351666  ;;  %2258 = vst.msk [vmem:[%s4346_s10 + $0x90] sm:$0xff] %vm2239_vm7, %v4497_v13  ;;  %v4511_v50 = vadd.f32 %v3152_v61, %v4341_v47  ;;  %v1729_v28 = vpop.f32.mrb[51].mxu1 }
 0x2ac   : > { %5142 = vst [vmem:[#allocation28_spill] sm:$0xff] %v4503_v29  ;;  %v2282_v31 = vmul.f32 0.5, %v2217_v16  ;;  %v2218_v10 = vmul.f32 %v3324_v9, %v4414_v17  ;;  %v2127_v43 = vmin.f32 %v4503_v29, 4.1351666  ;;  %2256 = vst.msk [vmem:[%s4346_s10 + $0x80] sm:$0xff] %vm2239_vm7, %v4503_v29  ;;  %2346 = vrot.lane.b32.xlu1 %v2277_v38, %s3395_s21  ;;  %v3326_v19 = vpop.eup %3325  ;;  %v4524_v61 = vadd.f32 %v4341_v47, %v1729_v28  ;;  %v4526_v16 = vpop.permute.xlu0 %2019 }
 0x2ad   : > { %5143 = vst [vmem:[#allocation29_spill] sm:$0xff] %v4511_v50  ;;  %v2179_v30 = vmul.f32 1.442695, %v2129_v54  ;;  %v2130_v6 = vmin.f32 %v4511_v50, 4.1351666  ;;  %2259 = vst.msk [vmem:[%s4346_s10 + $0x98] sm:$0xff] %vm2239_vm7, %v4511_v50  ;;  %v2215_v29 = vmul.f32 %v3322_v58, %v4380_v51  ;;  %v4534_v21 = vpop.permute.xlu1 %2021 }
 0x2ae   : > { %5144 = vst [vmem:[#allocation30_spill] sm:$0xff] %v4524_v61  ;;  %5145 = vst [vmem:[#allocation31_spill] sm:$0xff] %v4526_v16  ;;  %v2283_v9 = vmul.f32 0.5, %v2218_v10  ;;  %v2175_v13 = vmul.f32 1.442695, %v2127_v43  ;;  %2356 = vrot.lane.b32.xlu0 %v2282_v31, %s3395_s21  ;;  %v2216_v43 = vmul.f32 %v3326_v19, %v4385_v2 }
 0x2af   : > { %3335 = vpow2.f32 %v2179_v30  ;;  %v2181_v38 = vmul.f32 1.442695, %v2130_v6  ;;  %v2128_v54 = vmin.f32 %v4524_v61, 4.1351666  ;;  %2257 = vst.msk [vmem:[%s4346_s10 + $0x88] sm:$0xff] %vm2239_vm7, %v4524_v61  ;;  %v2280_v50 = vmul.f32 0.5, %v2215_v29 }
 0x2b0   : > { %3337 = vpow2.f32 %v2175_v13  ;;  %v3155_v28 = vpop.f32.mrb[52].mxu1  ;;  %2358 = vrot.lane.b32.xlu1 %v2283_v9, %s3395_s21  ;;  %v2281_v29 = vmul.f32 0.5, %v2216_v43 }
 0x2b1   : > { %v3328_v31 = vpop.eup %3327  ;;  %3339 = vpow2.f32 %v2181_v38  ;;  %v2177_v58 = vmul.f32 1.442695, %v2128_v54  ;;  %v4539_v10 = vadd.f32 %v3155_v28, %v4341_v47  ;;  %v1742_v30 = vpop.f32.mrb[53].mxu1 }
 0x2b2   : > { %v3330_v6 = vpop.eup %3329  ;;  %v2221_v61 = vmul.f32 %v3328_v31, %v4457_v27  ;;  %v4543_v13 = vadd.f32 %v4341_v47, %v1742_v30  ;;  %v3156_v59 = vpop.f32.mrb[54].mxu1  ;;  %2352 = vrot.lane.b32.xlu0 %v2280_v50, %s3395_s21 }
 0x2b3   : > { %5146 = vst [vmem:[#allocation32_spill] sm:$0xff] %v4539_v10  ;;  %v3332_v9 = vpop.eup %3331  ;;  %3341 = vpow2.f32 %v2177_v58  ;;  %v2133_v19 = vmin.f32 %v4539_v10, 4.1351666  ;;  %2262 = vst.msk [vmem:[%s4346_s10 + $0xb0] sm:$0xff] %vm2239_vm7, %v4539_v10  ;;  %v4550_v38 = vpop.permute.xlu0 %2023  ;;  %v4553_v54 = vadd.f32 %v3156_v59, %v4341_v47 }
 0x2b4   : > { %5147 = vst [vmem:[#allocation33_spill] sm:$0xff] %v4543_v13  ;;  %v1745_v28 = vpop.f32.mrb[55].mxu1  ;;  %v2286_v31 = vmul.f32 0.5, %v2221_v61  ;;  %v2222_v30 = vmul.f32 %v3332_v9, %v4471_v5  ;;  %v2131_v50 = vmin.f32 %v4543_v13, 4.1351666  ;;  %2260 = vst.msk [vmem:[%s4346_s10 + $0xa0] sm:$0xff] %vm2239_vm7, %v4543_v13  ;;  %2354 = vrot.lane.b32.xlu1 %v2281_v29, %s3395_s21  ;;  %v3334_v43 = vpop.eup %3333  ;;  %v2219_v13 = vmul.f32 %v3330_v6, %v4430_v24 }
 0x2b5   : > { %5148 = vst [vmem:[#allocation34_spill] sm:$0xff] %v4553_v54  ;;  %v2187_v58 = vmul.f32 1.442695, %v2133_v19  ;;  %v4561_v10 = vpop.permute.xlu1 %2025  ;;  %v2134_v27 = vmin.f32 %v4553_v54, 4.1351666  ;;  %2263 = vst.msk [vmem:[%s4346_s10 + $0xb8] sm:$0xff] %vm2239_vm7, %v4553_v54  ;;  %v4568_v59 = vadd.f32 %v4341_v47, %v1745_v28  ;;  %v2220_v28 = vmul.f32 %v3334_v43, %v4445_v33 }
 0x2b6   : > { %v2287_v61 = vmul.f32 0.5, %v2222_v30  ;;  %v2183_v9 = vmul.f32 1.442695, %v2131_v50  ;;  %2364 = vrot.lane.b32.xlu0 %v2286_v31, %s3395_s21  ;;  %v2284_v54 = vmul.f32 0.5, %v2219_v13 }
 0x2b7   : > { %5149 = vst [vmem:[#allocation35_spill] sm:$0xff] %v4568_v59  ;;  %3343 = vpow2.f32 %v2187_v58  ;;  %v2189_v29 = vmul.f32 1.442695, %v2134_v27  ;;  %v2132_v19 = vmin.f32 %v4568_v59, 4.1351666  ;;  %2261 = vst.msk [vmem:[%s4346_s10 + $0xa8] sm:$0xff] %vm2239_vm7, %v4568_v59  ;;  %v4578_v50 = vpop.permute.xlu0 %2027 }
 0x2b8   : > { %3345 = vpow2.f32 %v2183_v9  ;;  %v3159_v5 = vpop.f32.mrb[56].mxu1  ;;  %2366 = vrot.lane.b32.xlu1 %v2287_v61, %s3395_s21  ;;  %5150 = vst [vmem:[#allocation36_spill] sm:$0xff] %v4578_v50  ;;  %v2285_v43 = vmul.f32 0.5, %v2220_v28 }
 0x2b9   : > { %v3336_v30 = vpop.eup %3335  ;;  %3347 = vpow2.f32 %v2189_v29  ;;  %v2185_v31 = vmul.f32 1.442695, %v2132_v19  ;;  %v4581_v27 = vadd.f32 %v3159_v5, %v4341_v47  ;;  %v1758_v6 = vpop.f32.mrb[57].mxu1 }
 0x2ba   : > { %v3338_v58 = vpop.eup %3337  ;;  %v2225_v9 = vmul.f32 %v3336_v30, %v4526_v16  ;;  %v4585_v59 = vadd.f32 %v4341_v47, %v1758_v6  ;;  %v3160_v13 = vpop.f32.mrb[58].mxu1  ;;  %2360 = vrot.lane.b32.xlu0 %v2284_v54, %s3395_s21 }
 0x2bb   : > { %5151 = vst [vmem:[#allocation37_spill] sm:$0xff] %v4581_v27  ;;  %v3340_v61 = vpop.eup %3339  ;;  %3349 = vpow2.f32 %v2185_v31  ;;  %v4588_v29 = vpop.permute.xlu1 %2029  ;;  %v2137_v5 = vmin.f32 %v4581_v27, 4.1351666  ;;  %2266 = vst.msk [vmem:[%s4346_s10 + $0xd0] sm:$0xff] %vm2239_vm7, %v4581_v27  ;;  %v4595_v19 = vadd.f32 %v3160_v13, %v4341_v47  ;;  %v2223_v27 = vmul.f32 %v3338_v58, %v4492_v42 }
 0x2bc   : > { %5152 = vst [vmem:[#allocation38_spill] sm:$0xff] %v4585_v59  ;;  %5153 = vst [vmem:[#allocation39_spill] sm:$0xff] %v4588_v29  ;;  %v1761_v30 = vpop.f32.mrb[59].mxu1  ;;  %v2290_v6 = vmul.f32 0.5, %v2225_v9  ;;  %v2226_v16 = vmul.f32 %v3340_v61, %v4534_v21  ;;  %v2135_v54 = vmin.f32 %v4585_v59, 4.1351666  ;;  %2362 = vrot.lane.b32.xlu1 %v2285_v43, %s3395_s21 }
 0x2bd   : > { %5154 = vst [vmem:[#allocation40_spill] sm:$0xff] %v4595_v19  ;;  %2264 = vst.msk [vmem:[%s4346_s10 + $0xc0] sm:$0xff] %vm2239_vm7, %v4585_v59  ;;  %v3342_v28 = vpop.eup %3341  ;;  %v2195_v31 = vmul.f32 1.442695, %v2137_v5  ;;  %v2138_v33 = vmin.f32 %v4595_v19, 4.1351666  ;;  %v4608_v13 = vadd.f32 %v4341_v47, %v1761_v30  ;;  %v4612_v59 = vpop.permute.xlu0 %2031 }
 0x2be   : > { %2267 = vst.msk [vmem:[%s4346_s10 + $0xd8] sm:$0xff] %vm2239_vm7, %v4595_v19  ;;  %v2291_v9 = vmul.f32 0.5, %v2226_v16  ;;  %v2191_v61 = vmul.f32 1.442695, %v2135_v54  ;;  %2372 = vrot.lane.b32.xlu0 %v2290_v6, %s3395_s21  ;;  %v2288_v19 = vmul.f32 0.5, %v2223_v27  ;;  %v2224_v16 = vmul.f32 %v3342_v28, %v4499_v35 }
 0x2bf   : > { %5155 = vst [vmem:[#allocation41_spill] sm:$0xff] %v4608_v13  ;;  %3351 = vpow2.f32 %v2195_v31  ;;  %v2197_v43 = vmul.f32 1.442695, %v2138_v33  ;;  %v2136_v5 = vmin.f32 %v4608_v13, 4.1351666  ;;  %2265 = vst.msk [vmem:[%s4346_s10 + $0xc8] sm:$0xff] %vm2239_vm7, %v4608_v13  ;;  %v4620_v54 = vpop.permute.xlu1 %2033 }
 0x2c0   : > { %3353 = vpow2.f32 %v2191_v61  ;;  %2374 = vrot.lane.b32.xlu1 %v2291_v9, %s3395_s21  ;;  %v3163_v30 = vpop.f32.mrb[60].mxu1  ;;  %5156 = vst [vmem:[#allocation42_spill] sm:$0xff] %v4620_v54  ;;  %v2289_v28 = vmul.f32 0.5, %v2224_v16 }
 0x2c1   : > { %v3344_v6 = vpop.eup %3343  ;;  %3355 = vpow2.f32 %v2197_v43  ;;  %v2193_v58 = vmul.f32 1.442695, %v2136_v5  ;;  %v4623_v33 = vadd.f32 %v3163_v30, %v4341_v47  ;;  %v1774_v31 = vpop.f32.mrb[61].mxu1 }
 0x2c2   : > { %v3346_v42 = vpop.eup %3345  ;;  %v2229_v61 = vmul.f32 %v3344_v6, %v4578_v50  ;;  %v4627_v9 = vadd.f32 %v4341_v47, %v1774_v31  ;;  %v3164_v27 = vpop.f32.mrb[62].mxu1  ;;  %2368 = vrot.lane.b32.xlu0 %v2288_v19, %s3395_s21 }
 0x2c3   : > { %5157 = vst [vmem:[#allocation43_spill] sm:$0xff] %v4623_v33  ;;  %v3348_v13 = vpop.eup %3347  ;;  %3357 = vpow2.f32 %v2193_v58  ;;  %v2141_v43 = vmin.f32 %v4623_v33, 4.1351666  ;;  %2270 = vst.msk [vmem:[%s4346_s10 + $0xf0] sm:$0xff] %vm2239_vm7, %v4623_v33  ;;  %v4635_v5 = vadd.f32 %v3164_v27, %v4341_v47  ;;  %v1777_v30 = vpop.f32.mrb[63].mxu1 }
 0x2c4   : > { %5158 = vst [vmem:[#allocation44_spill] sm:$0xff] %v4627_v9  ;;  %v2294_v6 = vmul.f32 0.5, %v2229_v61  ;;  %v2230_v31 = vmul.f32 %v3348_v13, %v4588_v29  ;;  %v2139_v50 = vmin.f32 %v4627_v9, 4.1351666  ;;  %2268 = vst.msk [vmem:[%s4346_s10 + $0xe0] sm:$0xff] %vm2239_vm7, %v4627_v9  ;;  %2370 = vrot.lane.b32.xlu1 %v2289_v28, %s3395_s21  ;;  %v4643_v16 = vpop.permute.xlu0 %2035  ;;  %v4650_v61 = vadd.f32 %v4341_v47, %v1777_v30  ;;  %v4654_v29 = vpop.permute.xlu1 %2037 }
 0x2c5   : > { %5159 = vst [vmem:[#allocation45_spill] sm:$0xff] %v4635_v5  ;;  %v3350_v19 = vpop.eup %3349  ;;  %v2203_v58 = vmul.f32 1.442695, %v2141_v43  ;;  %v2142_v33 = vmin.f32 %v4635_v5, 4.1351666  ;;  %2271 = vst.msk [vmem:[%s4346_s10 + $0xf8] sm:$0xff] %vm2239_vm7, %v4635_v5  ;;  %v2227_v9 = vmul.f32 %v3346_v42, %v4550_v38 }
 0x2c6   : > { %5160 = vst [vmem:[#allocation46_spill] sm:$0xff] %v4650_v61  ;;  %v2295_v13 = vmul.f32 0.5, %v2230_v31  ;;  %v2199_v27 = vmul.f32 1.442695, %v2139_v50  ;;  %2380 = vrot.lane.b32.xlu0 %v2294_v6, %s3395_s21  ;;  %v2140_v43 = vmin.f32 %v4650_v61, 4.1351666  ;;  %v2228_v30 = vmul.f32 %v3350_v19, %v4561_v10 }
 0x2c7   : > { %3359 = vpow2.f32 %v2203_v58  ;;  %v2205_v28 = vmul.f32 1.442695, %v2142_v33  ;;  %2269 = vst.msk [vmem:[%s4346_s10 + $0xe8] sm:$0xff] %vm2239_vm7, %v4650_v61  ;;  %v2292_v47 = vmul.f32 0.5, %v2227_v9 }
 0x2c8   : > { %3361 = vpow2.f32 %v2199_v27  ;;  %2382 = vrot.lane.b32.xlu1 %v2295_v13, %s3395_s21  ;;  %v2201_v6 = vmul.f32 1.442695, %v2140_v43  ;;  %v2293_v33 = vmul.f32 0.5, %v2228_v30  ;;  %v4664_v5 = vpop.permute.xlu0 %2039  ;;  %v4669_v13 = vpop.permute.xlu1 %2041 }
 0x2c9   : > { %v3352_v50 = vpop.eup %3351  ;;  %3363 = vpow2.f32 %v2205_v28 }
 0x2ca   : > { %v3354_v31 = vpop.eup %3353  ;;  %v2233_v42 = vmul.f32 %v3352_v50, %v4643_v16  ;;  %2376 = vrot.lane.b32.xlu0 %v2292_v47, %s3395_s21  ;;  %3365 = vpow2.f32 %v2201_v6 }
 0x2cb   : > { %v3356_v58 = vpop.eup %3355  ;;  %v2231_v9 = vmul.f32 %v3354_v31, %v4612_v59 }
 0x2cc   : > { %v2298_v61 = vmul.f32 0.5, %v2233_v42  ;;  %v2234_v27 = vmul.f32 %v3356_v58, %v4654_v29  ;;  %2378 = vrot.lane.b32.xlu1 %v2293_v33, %s3395_s21  ;;  %v4674_v50 = vpop.permute.xlu0 %2043  ;;  %v4678_v58 = vpop.permute.xlu1 %2045 }
 0x2cd   : > { %v3358_v19 = vpop.eup %3357  ;;  %v2296_v47 = vmul.f32 0.5, %v2231_v9 }
 0x2ce   : > { %v2299_v28 = vmul.f32 0.5, %v2234_v27  ;;  %2388 = vrot.lane.b32.xlu0 %v2298_v61, %s3395_s21  ;;  %v2232_v43 = vmul.f32 %v3358_v19, %v4620_v54 }
 0x2d0   : > { %2390 = vrot.lane.b32.xlu1 %v2299_v28, %s3395_s21  ;;  %v2297_v31 = vmul.f32 0.5, %v2232_v43 }
 0x2d1   : > { %v3360_v30 = vpop.eup %3359 }
 0x2d2   : > { %v3362_v6 = vpop.eup %3361  ;;  %v2237_v42 = vmul.f32 %v3360_v30, %v4674_v50  ;;  %2384 = vrot.lane.b32.xlu0 %v2296_v47, %s3395_s21  ;;  %v1953_v30 = vmul.f32 %v4265_v8, %v4349_v12 }
 0x2d3   : > { %v3364_v33 = vpop.eup %3363  ;;  %v2235_v19 = vmul.f32 %v3362_v6, %v4664_v5  ;;  %v1954_v6 = vmul.f32 %v4267_v52, %v4361_v48  ;;  %v1957_v52 = vmul.f32 %v4273_v40, %v4383_v23 }
 0x2d4   : > { %v2302_v27 = vmul.f32 0.5, %v2237_v42  ;;  %v2238_v61 = vmul.f32 %v3364_v33, %v4678_v58  ;;  %2386 = vrot.lane.b32.xlu1 %v2297_v31, %s3395_s21  ;;  %v3366_v9 = vpop.eup %3365  ;;  %v1951_v42 = vmul.f32 %v4261_v49, %v4354_v3  ;;  %v2081_v31 = vadd.f32 %v4329_v56, %v1953_v30 }
 0x2d5   : > { %v2236_v54 = vmul.f32 %v3366_v9, %v4669_v13  ;;  %v2300_v47 = vmul.f32 0.5, %v2235_v19  ;;  %v1952_v33 = vmul.f32 %v4263_v1, %v4370_v45  ;;  %v2085_v23 = vadd.f32 %v4351_v60, %v1957_v52 }
 0x2d6   : > { %v2303_v28 = vmul.f32 0.5, %v2238_v61  ;;  %2396 = vrot.lane.b32.xlu0 %v2302_v27, %s3395_s21  ;;  %v2079_v1 = vadd.f32 %v4325_v15, %v1951_v42  ;;  %v1955_v15 = vmul.f32 %v4269_v37, %v4388_v62  ;;  %v1962_v30 = vmul.f32 %v4283_v4, %v4428_v55 }
 0x2d7   : > { %v2301_v43 = vmul.f32 0.5, %v2236_v54  ;;  %v2082_v54 = vadd.f32 %v4331_v34, %v1954_v6  ;;  %v1958_v34 = vmul.f32 %v4275_v25, %v4395_v63  ;;  %v2080_v48 = vadd.f32 %v4327_v36, %v1952_v33 }
 0x2d8   : > { %2398 = vrot.lane.b32.xlu1 %v2303_v28, %s3395_s21  ;;  %v1956_v36 = vmul.f32 %v4271_v22, %v4402_v0 }
 0x2d9   : > { %v2086_v28 = vadd.f32 %v4363_v14, %v1958_v34  ;;  %v2083_v14 = vadd.f32 %v4333_v44, %v1955_v15  ;;  %v1959_v44 = vmul.f32 %v4277_v7, %v4421_v11  ;;  %v5167_v15 = vld [vmem:[#allocation24_spill] sm:$0xff] }
 0x2da   : > { %2392 = vrot.lane.b32.xlu0 %v2300_v47, %s3395_s21  ;;  %v1961_v47 = vmul.f32 %v4281_v39, %v4417_v57  ;;  %v2084_v57 = vadd.f32 %v4336_v32, %v1956_v36  ;;  %v1960_v32 = vmul.f32 %v4279_v53, %v4443_v26  ;;  %v5168_v36 = vld [vmem:[#allocation27_spill] sm:$0xff] }
 0x2dc   : > { %2394 = vrot.lane.b32.xlu1 %v2301_v43, %s3395_s21 }
 0x310   : > { %v2341_v27 = vpop.permute.xlu0 %2340 }
 0x311   : > { %v2434_v61 = vsub.f32 %v2081_v31, %v2341_v27  ;;  %v2532_v19 = vadd.f32 %v2341_v27, %v2081_v31  ;;  %v2089_v31 = vadd.f32 %v4408_v41, %v1961_v47  ;;  %v2090_v27 = vadd.f32 %v4414_v17, %v1962_v30 }
 0x312   : > { %v2343_v8 = vpop.permute.xlu1 %2342  ;;  %v2087_v17 = vadd.f32 %v4380_v51, %v1959_v44  ;;  %v5162_v51 = vld [vmem:[#allocation23_spill] sm:$0xff]  ;;  %v5174_v44 = vld [vmem:[#allocation5_spill] sm:$0xff] }
 0x313   : > { %2467 = vst.msk [vmem:[%s4346_s10 + $0x10] sm:$0xff] %vm2464_vm8, %v2434_v61  ;;  %v2435_v49 = vsub.f32 %v2082_v54, %v2343_v8  ;;  %v2533_v56 = vadd.f32 %v2343_v8, %v2082_v54  ;;  %2598 = vrot.lane.b32.xlu0 %v2532_v19, %s3396_s11  ;;  %v1965_v54 = vmul.f32 %v4289_v46, %v4455_v18  ;;  %v5161_v19 = vld [vmem:[#allocation4_spill] sm:$0xff] }
 0x314   : > { %v2337_v12 = vpop.permute.xlu0 %2336  ;;  %2500 = vst.msk [vmem:[%s4346_s10 + $0x10] sm:$0xff] %vm2497_vm9, %v2434_v61  ;;  %v1966_v8 = vmul.f32 %v5161_v19, %v4469_v20  ;;  %v2088_v18 = vadd.f32 %v4385_v2, %v1960_v32  ;;  %v5165_v2 = vld [vmem:[#allocation25_spill] sm:$0xff]  ;;  %v5179_v19 = vld [vmem:[#allocation11_spill] sm:$0xff] }
 0x315   : > { %2468 = vst.msk [vmem:[%s4346_s10 + $0x18] sm:$0xff] %vm2464_vm8, %v2435_v49  ;;  %v2432_v40 = vsub.f32 %v2079_v1, %v2337_v12  ;;  %v2530_v3 = vadd.f32 %v2337_v12, %v2079_v1  ;;  %2600 = vrot.lane.b32.xlu1 %v2533_v56, %s3396_s11  ;;  %v5163_v56 = vld [vmem:[#allocation2_spill] sm:$0xff] }
 0x316   : > { %v2339_v45 = vpop.permute.xlu1 %2338  ;;  %2501 = vst.msk [vmem:[%s4346_s10 + $0x18] sm:$0xff] %vm2497_vm9, %v2435_v49  ;;  %v1963_v1 = vmul.f32 %v5163_v56, %v5162_v51  ;;  %v5164_v12 = vld [vmem:[#allocation22_spill] sm:$0xff]  ;;  %v5182_v56 = vld [vmem:[#allocation12_spill] sm:$0xff] }
 0x317   : > { %2465 = vst.msk [vmem:[%s4346_s10] sm:$0xff] %vm2464_vm8, %v2432_v40  ;;  %v2433_v25 = vsub.f32 %v2080_v48, %v2339_v45  ;;  %v2531_v63 = vadd.f32 %v2339_v45, %v2080_v48  ;;  %2594 = vrot.lane.b32.xlu0 %v2530_v3, %s3396_s11  ;;  %v2093_v34 = vadd.f32 %v5164_v12, %v1965_v54  ;;  %v5166_v48 = vld [vmem:[#allocation3_spill] sm:$0xff]  ;;  %v5181_v51 = vld [vmem:[#allocation34_spill] sm:$0xff] }
 0x318   : > { %v2349_v9 = vpop.permute.xlu0 %2348  ;;  %2498 = vst.msk [vmem:[%s4346_s10] sm:$0xff] %vm2497_vm9, %v2432_v40  ;;  %v1964_v45 = vmul.f32 %v5166_v48, %v5165_v2  ;;  %v2091_v47 = vadd.f32 %v4430_v24, %v1963_v1  ;;  %v5173_v24 = vld [vmem:[#allocation28_spill] sm:$0xff]  ;;  %v1974_v1 = vmul.f32 %v5182_v56, %v5181_v51  ;;  %v5184_v2 = vld [vmem:[#allocation9_spill] sm:$0xff] }
 0x319   : > { %2466 = vst.msk [vmem:[%s4346_s10 + $0x8] sm:$0xff] %vm2464_vm8, %v2433_v25  ;;  %v2438_v37 = vsub.f32 %v2085_v23, %v2349_v9  ;;  %v2536_v60 = vadd.f32 %v2349_v9, %v2085_v23  ;;  %2596 = vrot.lane.b32.xlu1 %v2531_v63, %s3396_s11  ;;  %v2094_v23 = vadd.f32 %v5167_v15, %v1966_v8  ;;  %v5200_v51 = vld [vmem:[#allocation20_spill] sm:$0xff] }
 0x31a   : > { %v2351_v62 = vpop.permute.xlu1 %2350  ;;  %2499 = vst.msk [vmem:[%s4346_s10 + $0x8] sm:$0xff] %vm2497_vm9, %v2433_v25 }
 0x31b   : > { %2471 = vst.msk [vmem:[%s4346_s10 + $0x30] sm:$0xff] %vm2464_vm8, %v2438_v37  ;;  %v2439_v43 = vsub.f32 %v2086_v28, %v2351_v62  ;;  %v2537_v22 = vadd.f32 %v2351_v62, %v2086_v28  ;;  %2606 = vrot.lane.b32.xlu0 %v2536_v60, %s3396_s11  ;;  %v5169_v28 = vld [vmem:[#allocation7_spill] sm:$0xff] }
 0x31c   : > { %v2345_v0 = vpop.permute.xlu0 %2344  ;;  %2504 = vst.msk [vmem:[%s4346_s10 + $0x30] sm:$0xff] %vm2497_vm9, %v2438_v37  ;;  %v1969_v37 = vmul.f32 %v5169_v28, %v5168_v36  ;;  %v5188_v28 = vld [vmem:[#allocation39_spill] sm:$0xff] }
 0x31d   : > { %2472 = vst.msk [vmem:[%s4346_s10 + $0x38] sm:$0xff] %vm2464_vm8, %v2439_v43  ;;  %v2436_v6 = vsub.f32 %v2083_v14, %v2345_v0  ;;  %v2534_v39 = vadd.f32 %v2345_v0, %v2083_v14  ;;  %2608 = vrot.lane.b32.xlu1 %v2537_v22, %s3396_s11  ;;  %v5170_v22 = vld [vmem:[#allocation29_spill] sm:$0xff]  ;;  %v5171_v14 = vld [vmem:[#allocation8_spill] sm:$0xff] }
 0x31e   : > { %v2347_v42 = vpop.permute.xlu1 %2346  ;;  %2505 = vst.msk [vmem:[%s4346_s10 + $0x38] sm:$0xff] %vm2497_vm9, %v2439_v43  ;;  %v1970_v0 = vmul.f32 %v5171_v14, %v5170_v22  ;;  %v5190_v22 = vld [vmem:[#allocation15_spill] sm:$0xff] }
 0x31f   : > { %2469 = vst.msk [vmem:[%s4346_s10 + $0x20] sm:$0xff] %vm2464_vm8, %v2436_v6  ;;  %v2437_v4 = vsub.f32 %v2084_v57, %v2347_v42  ;;  %v2535_v55 = vadd.f32 %v2347_v42, %v2084_v57  ;;  %2602 = vrot.lane.b32.xlu0 %v2534_v39, %s3396_s11  ;;  %v5172_v39 = vld [vmem:[#allocation21_spill] sm:$0xff] }
 0x320   : > { %v2357_v33 = vpop.permute.xlu0 %2356  ;;  %2502 = vst.msk [vmem:[%s4346_s10 + $0x20] sm:$0xff] %vm2497_vm9, %v2436_v6  ;;  %v2092_v57 = vadd.f32 %v5172_v39, %v1964_v45  ;;  %v2098_v54 = vadd.f32 %v4534_v21, %v1970_v0  ;;  %v5180_v21 = vld [vmem:[#allocation26_spill] sm:$0xff]  ;;  %v5185_v45 = vld [vmem:[#allocation36_spill] sm:$0xff] }
 0x321   : > { %2470 = vst.msk [vmem:[%s4346_s10 + $0x28] sm:$0xff] %vm2464_vm8, %v2437_v4  ;;  %v2442_v7 = vsub.f32 %v2089_v31, %v2357_v33  ;;  %v2540_v11 = vadd.f32 %v2357_v33, %v2089_v31  ;;  %2604 = vrot.lane.b32.xlu1 %v2535_v55, %s3396_s11  ;;  %v1967_v31 = vmul.f32 %v5174_v44, %v5173_v24 }
 0x322   : > { %v2359_v41 = vpop.permute.xlu1 %2358  ;;  %2503 = vst.msk [vmem:[%s4346_s10 + $0x28] sm:$0xff] %vm2497_vm9, %v2437_v4  ;;  %v5175_v4 = vld [vmem:[#allocation31_spill] sm:$0xff] }
 0x323   : > { %2475 = vst.msk [vmem:[%s4346_s10 + $0x50] sm:$0xff] %vm2464_vm8, %v2442_v7  ;;  %v2443_v61 = vsub.f32 %v2090_v27, %v2359_v41  ;;  %v2541_v53 = vadd.f32 %v2359_v41, %v2090_v27  ;;  %2614 = vrot.lane.b32.xlu0 %v2540_v11, %s3396_s11  ;;  %v2097_v55 = vadd.f32 %v5175_v4, %v1969_v37  ;;  %v5177_v11 = vld [vmem:[#allocation6_spill] sm:$0xff] }
 0x324   : > { %v2353_v26 = vpop.permute.xlu0 %2352  ;;  %2508 = vst.msk [vmem:[%s4346_s10 + $0x50] sm:$0xff] %vm2497_vm9, %v2442_v7  ;;  %v5176_v7 = vld [vmem:[#allocation30_spill] sm:$0xff]  ;;  %v2102_v37 = vadd.f32 %v5188_v28, %v1974_v1 }
 0x325   : > { %2476 = vst.msk [vmem:[%s4346_s10 + $0x58] sm:$0xff] %vm2464_vm8, %v2443_v61  ;;  %v2440_v52 = vsub.f32 %v2087_v17, %v2353_v26  ;;  %v2538_v46 = vadd.f32 %v2353_v26, %v2087_v17  ;;  %2616 = vrot.lane.b32.xlu1 %v2541_v53, %s3396_s11  ;;  %v1968_v41 = vmul.f32 %v5177_v11, %v5176_v7  ;;  %v5178_v26 = vld [vmem:[#allocation32_spill] sm:$0xff] }
 0x326   : > { %v2355_v49 = vpop.permute.xlu1 %2354  ;;  %2509 = vst.msk [vmem:[%s4346_s10 + $0x58] sm:$0xff] %vm2497_vm9, %v2443_v61  ;;  %v1973_v8 = vmul.f32 %v5179_v19, %v5178_v26  ;;  %v5197_v19 = vld [vmem:[#allocation43_spill] sm:$0xff] }
 0x327   : > { %2473 = vst.msk [vmem:[%s4346_s10 + $0x40] sm:$0xff] %vm2464_vm8, %v2440_v52  ;;  %v2441_v20 = vsub.f32 %v2088_v18, %v2355_v49  ;;  %v2539_v40 = vadd.f32 %v2355_v49, %v2088_v18  ;;  %2610 = vrot.lane.b32.xlu0 %v2538_v46, %s3396_s11  ;;  %v2095_v18 = vadd.f32 %v5180_v21, %v1967_v31 }
 0x328   : > { %v2365_v3 = vpop.permute.xlu0 %2364  ;;  %2506 = vst.msk [vmem:[%s4346_s10 + $0x40] sm:$0xff] %vm2497_vm9, %v2440_v52  ;;  %v2101_v15 = vadd.f32 %v5185_v45, %v1973_v8  ;;  %v5198_v8 = vld [vmem:[#allocation19_spill] sm:$0xff] }
 0x329   : > { %2474 = vst.msk [vmem:[%s4346_s10 + $0x48] sm:$0xff] %vm2464_vm8, %v2441_v20  ;;  %v2446_v25 = vsub.f32 %v2093_v34, %v2365_v3  ;;  %v2544_v63 = vadd.f32 %v2365_v3, %v2093_v34  ;;  %2612 = vrot.lane.b32.xlu1 %v2539_v40, %s3396_s11  ;;  %v5183_v3 = vld [vmem:[#allocation33_spill] sm:$0xff] }
 0x32a   : > { %v2367_v9 = vpop.permute.xlu1 %2366  ;;  %2507 = vst.msk [vmem:[%s4346_s10 + $0x48] sm:$0xff] %vm2497_vm9, %v2441_v20  ;;  %v2096_v20 = vadd.f32 %v4499_v35, %v1968_v41  ;;  %v1971_v48 = vmul.f32 %v5184_v2, %v5183_v3  ;;  %v5186_v35 = vld [vmem:[#allocation35_spill] sm:$0xff]  ;;  %v5203_v3 = vld [vmem:[#allocation17_spill] sm:$0xff] }
 0x32b   : > { %2479 = vst.msk [vmem:[%s4346_s10 + $0x70] sm:$0xff] %vm2464_vm8, %v2446_v25  ;;  %v2447_v60 = vsub.f32 %v2094_v23, %v2367_v9  ;;  %v2545_v62 = vadd.f32 %v2367_v9, %v2094_v23  ;;  %2622 = vrot.lane.b32.xlu0 %v2544_v63, %s3396_s11  ;;  %v5187_v9 = vld [vmem:[#allocation10_spill] sm:$0xff] }
 0x32c   : > { %v2361_v43 = vpop.permute.xlu0 %2360  ;;  %2512 = vst.msk [vmem:[%s4346_s10 + $0x70] sm:$0xff] %vm2497_vm9, %v2446_v25  ;;  %v1972_v36 = vmul.f32 %v5187_v9, %v5186_v35 }
 0x32d   : > { %2480 = vst.msk [vmem:[%s4346_s10 + $0x78] sm:$0xff] %vm2464_vm8, %v2447_v60  ;;  %v2444_v30 = vsub.f32 %v2091_v47, %v2361_v43  ;;  %v2542_v6 = vadd.f32 %v2361_v43, %v2091_v47  ;;  %2624 = vrot.lane.b32.xlu1 %v2545_v62, %s3396_s11  ;;  %v5189_v43 = vld [vmem:[#allocation37_spill] sm:$0xff] }
 0x32e   : > { %v2363_v42 = vpop.permute.xlu1 %2362  ;;  %2513 = vst.msk [vmem:[%s4346_s10 + $0x78] sm:$0xff] %vm2497_vm9, %v2447_v60  ;;  %v1977_v14 = vmul.f32 %v5190_v22, %v5189_v43  ;;  %v2100_v4 = vadd.f32 %v4561_v10, %v1972_v36  ;;  %v5195_v10 = vld [vmem:[#allocation41_spill] sm:$0xff] }
 0x32f   : > { %2477 = vst.msk [vmem:[%s4346_s10 + $0x60] sm:$0xff] %vm2464_vm8, %v2444_v30  ;;  %v2445_v33 = vsub.f32 %v2092_v57, %v2363_v42  ;;  %v2543_v32 = vadd.f32 %v2363_v42, %v2092_v57  ;;  %2618 = vrot.lane.b32.xlu0 %v2542_v6, %s3396_s11  ;;  %v2099_v6 = vadd.f32 %v4550_v38, %v1971_v48  ;;  %v5191_v57 = vld [vmem:[#allocation40_spill] sm:$0xff]  ;;  %v5193_v38 = vld [vmem:[#allocation38_spill] sm:$0xff] }
 0x330   : > { %v2373_v27 = vpop.permute.xlu0 %2372  ;;  %2510 = vst.msk [vmem:[%s4346_s10 + $0x60] sm:$0xff] %vm2497_vm9, %v2444_v30  ;;  %v5192_v42 = vld [vmem:[#allocation16_spill] sm:$0xff] }
 0x331   : > { %2478 = vst.msk [vmem:[%s4346_s10 + $0x68] sm:$0xff] %vm2464_vm8, %v2445_v33  ;;  %v2450_v61 = vsub.f32 %v2097_v55, %v2373_v27  ;;  %v2548_v53 = vadd.f32 %v2373_v27, %v2097_v55  ;;  %2620 = vrot.lane.b32.xlu1 %v2543_v32, %s3396_s11  ;;  %v1978_v24 = vmul.f32 %v5192_v42, %v5191_v57 }
 0x332   : > { %v2375_v17 = vpop.permute.xlu1 %2374  ;;  %2511 = vst.msk [vmem:[%s4346_s10 + $0x68] sm:$0xff] %vm2497_vm9, %v2445_v33  ;;  %v5194_v33 = vld [vmem:[#allocation13_spill] sm:$0xff]  ;;  %v2105_v27 = vadd.f32 %v4643_v16, %v1977_v14 }
 0x333   : > { %2483 = vst.msk [vmem:[%s4346_s10 + $0x90] sm:$0xff] %vm2464_vm8, %v2450_v61  ;;  %v2451_v52 = vsub.f32 %v2098_v54, %v2375_v17  ;;  %v2549_v46 = vadd.f32 %v2375_v17, %v2098_v54  ;;  %2630 = vrot.lane.b32.xlu0 %v2548_v53, %s3396_s11  ;;  %v1975_v32 = vmul.f32 %v5194_v33, %v5193_v38  ;;  %v5196_v54 = vld [vmem:[#allocation14_spill] sm:$0xff] }
 0x334   : > { %v2369_v49 = vpop.permute.xlu0 %2368  ;;  %2516 = vst.msk [vmem:[%s4346_s10 + $0x90] sm:$0xff] %vm2497_vm9, %v2450_v61  ;;  %v1976_v61 = vmul.f32 %v5196_v54, %v5195_v10  ;;  %v2106_v53 = vadd.f32 %v4654_v29, %v1978_v24 }
 0x335   : > { %2484 = vst.msk [vmem:[%s4346_s10 + $0x98] sm:$0xff] %vm2464_vm8, %v2451_v52  ;;  %v2448_v12 = vsub.f32 %v2095_v18, %v2369_v49  ;;  %v2546_v34 = vadd.f32 %v2369_v49, %v2095_v18  ;;  %2632 = vrot.lane.b32.xlu1 %v2549_v46, %s3396_s11  ;;  %v2103_v29 = vadd.f32 %v4612_v59, %v1975_v32  ;;  %v5199_v49 = vld [vmem:[#allocation45_spill] sm:$0xff]  ;;  %v5202_v59 = vld [vmem:[#allocation44_spill] sm:$0xff] }
 0x336   : > { %v2371_v40 = vpop.permute.xlu1 %2370  ;;  %2517 = vst.msk [vmem:[%s4346_s10 + $0x98] sm:$0xff] %vm2497_vm9, %v2451_v52  ;;  %v1981_v52 = vmul.f32 %v5198_v8, %v5197_v19  ;;  %v1982_v56 = vmul.f32 %v5200_v51, %v5199_v49  ;;  %v1979_v2 = vmul.f32 %v5203_v3, %v5202_v59 }
 0x337   : > { %2481 = vst.msk [vmem:[%s4346_s10 + $0x80] sm:$0xff] %vm2464_vm8, %v2448_v12  ;;  %v2449_v23 = vsub.f32 %v2096_v20, %v2371_v40  ;;  %v2547_v25 = vadd.f32 %v2371_v40, %v2096_v20  ;;  %2626 = vrot.lane.b32.xlu0 %v2546_v34, %s3396_s11  ;;  %v5201_v34 = vld [vmem:[#allocation42_spill] sm:$0xff] }
 0x338   : > { %v2381_v63 = vpop.permute.xlu0 %2380  ;;  %2514 = vst.msk [vmem:[%s4346_s10 + $0x80] sm:$0xff] %vm2497_vm9, %v2448_v12  ;;  %v2104_v20 = vadd.f32 %v5201_v34, %v1976_v61  ;;  %v2109_v48 = vadd.f32 %v4674_v50, %v1981_v52  ;;  %v2110_v9 = vadd.f32 %v4678_v58, %v1982_v56 }
 0x339   : > { %2482 = vst.msk [vmem:[%s4346_s10 + $0x88] sm:$0xff] %vm2464_vm8, %v2449_v23  ;;  %v2454_v60 = vsub.f32 %v2101_v15, %v2381_v63  ;;  %v2552_v62 = vadd.f32 %v2381_v63, %v2101_v15  ;;  %2628 = vrot.lane.b32.xlu1 %v2547_v25, %s3396_s11  ;;  %v5204_v25 = vld [vmem:[#allocation46_spill] sm:$0xff] }
 0x33a   : > { %v2383_v47 = vpop.permute.xlu1 %2382  ;;  %2515 = vst.msk [vmem:[%s4346_s10 + $0x88] sm:$0xff] %vm2497_vm9, %v2449_v23  ;;  %v5205_v63 = vld [vmem:[#allocation18_spill] sm:$0xff] }
 0x33b   : > { %2487 = vst.msk [vmem:[%s4346_s10 + $0xb0] sm:$0xff] %vm2464_vm8, %v2454_v60  ;;  %v2455_v0 = vsub.f32 %v2102_v37, %v2383_v47  ;;  %v2553_v30 = vadd.f32 %v2383_v47, %v2102_v37  ;;  %2638 = vrot.lane.b32.xlu0 %v2552_v62, %s3396_s11  ;;  %v1980_v35 = vmul.f32 %v5205_v63, %v5204_v25 }
 0x33c   : > { %v2377_v39 = vpop.permute.xlu0 %2376  ;;  %2520 = vst.msk [vmem:[%s4346_s10 + $0xb0] sm:$0xff] %vm2497_vm9, %v2454_v60  ;;  %v2107_v37 = vadd.f32 %v4664_v5, %v1979_v2 }
 0x33d   : > { %2488 = vst.msk [vmem:[%s4346_s10 + $0xb8] sm:$0xff] %vm2464_vm8, %v2455_v0  ;;  %v2452_v44 = vsub.f32 %v2099_v6, %v2377_v39  ;;  %v2550_v31 = vadd.f32 %v2377_v39, %v2099_v6  ;;  %2640 = vrot.lane.b32.xlu1 %v2553_v30, %s3396_s11  ;;  %v2108_v47 = vadd.f32 %v4669_v13, %v1980_v35 }
 0x33e   : > { %v2379_v55 = vpop.permute.xlu1 %2378  ;;  %2521 = vst.msk [vmem:[%s4346_s10 + $0xb8] sm:$0xff] %vm2497_vm9, %v2455_v0 }
 0x33f   : > { %2485 = vst.msk [vmem:[%s4346_s10 + $0xa0] sm:$0xff] %vm2464_vm8, %v2452_v44  ;;  %v2453_v7 = vsub.f32 %v2100_v4, %v2379_v55  ;;  %v2551_v11 = vadd.f32 %v2379_v55, %v2100_v4  ;;  %2634 = vrot.lane.b32.xlu0 %v2550_v31, %s3396_s11 }
 0x340   : > { %v2389_v41 = vpop.permute.xlu0 %2388  ;;  %2518 = vst.msk [vmem:[%s4346_s10 + $0xa0] sm:$0xff] %vm2497_vm9, %v2452_v44 }
 0x341   : > { %2486 = vst.msk [vmem:[%s4346_s10 + $0xa8] sm:$0xff] %vm2464_vm8, %v2453_v7  ;;  %v2458_v16 = vsub.f32 %v2105_v27, %v2389_v41  ;;  %v2556_v17 = vadd.f32 %v2389_v41, %v2105_v27  ;;  %2636 = vrot.lane.b32.xlu1 %v2551_v11, %s3396_s11 }
 0x342   : > { %v2391_v26 = vpop.permute.xlu1 %2390  ;;  %2519 = vst.msk [vmem:[%s4346_s10 + $0xa8] sm:$0xff] %vm2497_vm9, %v2453_v7 }
 0x343   : > { %2491 = vst.msk [vmem:[%s4346_s10 + $0xd0] sm:$0xff] %vm2464_vm8, %v2458_v16  ;;  %v2459_v46 = vsub.f32 %v2106_v53, %v2391_v26  ;;  %v2557_v21 = vadd.f32 %v2391_v26, %v2106_v53  ;;  %2646 = vrot.lane.b32.xlu0 %v2556_v17, %s3396_s11 }
 0x344   : > { %v2385_v18 = vpop.permute.xlu0 %2384  ;;  %2524 = vst.msk [vmem:[%s4346_s10 + $0xd0] sm:$0xff] %vm2497_vm9, %v2458_v16 }
 0x345   : > { %2492 = vst.msk [vmem:[%s4346_s10 + $0xd8] sm:$0xff] %vm2464_vm8, %v2459_v46  ;;  %v2456_v1 = vsub.f32 %v2103_v29, %v2385_v18  ;;  %v2554_v12 = vadd.f32 %v2385_v18, %v2103_v29  ;;  %2648 = vrot.lane.b32.xlu1 %v2557_v21, %s3396_s11 }
 0x346   : > { %v2387_v40 = vpop.permute.xlu1 %2386  ;;  %2525 = vst.msk [vmem:[%s4346_s10 + $0xd8] sm:$0xff] %vm2497_vm9, %v2459_v46 }
 0x347   : > { %2489 = vst.msk [vmem:[%s4346_s10 + $0xc0] sm:$0xff] %vm2464_vm8, %v2456_v1  ;;  %v2457_v45 = vsub.f32 %v2104_v20, %v2387_v40  ;;  %v2555_v15 = vadd.f32 %v2387_v40, %v2104_v20  ;;  %2642 = vrot.lane.b32.xlu0 %v2554_v12, %s3396_s11 }
 0x348   : > { %v2397_v23 = vpop.permute.xlu0 %2396  ;;  %2522 = vst.msk [vmem:[%s4346_s10 + $0xc0] sm:$0xff] %vm2497_vm9, %v2456_v1 }
 0x349   : > { %2490 = vst.msk [vmem:[%s4346_s10 + $0xc8] sm:$0xff] %vm2464_vm8, %v2457_v45  ;;  %v2462_v50 = vsub.f32 %v2109_v48, %v2397_v23  ;;  %2644 = vrot.lane.b32.xlu1 %v2555_v15, %s3396_s11  ;;  %v2560_v5 = vadd.f32 %v2397_v23, %v2109_v48 }
 0x34a   : > { %v2399_v36 = vpop.permute.xlu1 %2398  ;;  %2523 = vst.msk [vmem:[%s4346_s10 + $0xc8] sm:$0xff] %vm2497_vm9, %v2457_v45 }
 0x34b   : > { %2495 = vst.msk [vmem:[%s4346_s10 + $0xf0] sm:$0xff] %vm2464_vm8, %v2462_v50  ;;  %v2463_v28 = vsub.f32 %v2110_v9, %v2399_v36  ;;  %v2561_v13 = vadd.f32 %v2399_v36, %v2110_v9 }
 0x34c   : > { %v2393_v60 = vpop.permute.xlu0 %2392  ;;  %2528 = vst.msk [vmem:[%s4346_s10 + $0xf0] sm:$0xff] %vm2497_vm9, %v2462_v50 }
 0x34d   : > { %2496 = vst.msk [vmem:[%s4346_s10 + $0xf8] sm:$0xff] %vm2464_vm8, %v2463_v28  ;;  %v2460_v58 = vsub.f32 %v2107_v37, %v2393_v60  ;;  %v2558_v62 = vadd.f32 %v2393_v60, %v2107_v37 }
 0x34e   : > { %v2395_v43 = vpop.permute.xlu1 %2394  ;;  %2529 = vst.msk [vmem:[%s4346_s10 + $0xf8] sm:$0xff] %vm2497_vm9, %v2463_v28 }
 0x34f   : > { %2493 = vst.msk [vmem:[%s4346_s10 + $0xe0] sm:$0xff] %vm2464_vm8, %v2460_v58  ;;  %v2461_v22 = vsub.f32 %v2108_v47, %v2395_v43  ;;  %v2559_v14 = vadd.f32 %v2395_v43, %v2108_v47  ;;  %2650 = vrot.lane.b32.xlu0 %v2558_v62, %s3396_s11 }
 0x350   : > { %2526 = vst.msk [vmem:[%s4346_s10 + $0xe0] sm:$0xff] %vm2497_vm9, %v2460_v58 }
 0x351   : > { %2494 = vst.msk [vmem:[%s4346_s10 + $0xe8] sm:$0xff] %vm2464_vm8, %v2461_v22  ;;  %2652 = vrot.lane.b32.xlu1 %v2559_v14, %s3396_s11 }
 0x352   : > { %2527 = vst.msk [vmem:[%s4346_s10 + $0xe8] sm:$0xff] %vm2497_vm9, %v2461_v22 }
 0x353   : > { %2654 = vrot.lane.b32.xlu0 %v2560_v5, %s3396_s11 }
 0x355   : > { %2656 = vrot.lane.b32.xlu1 %v2561_v13, %s3396_s11 }
 0x385   : > { %v2599_v0 = vpop.permute.xlu0 %2598 }
 0x386   : > { %2693 = vst.msk [vmem:[%s4346_s10 + $0x10] sm:$0xff] %vm2690_vm10, %v2599_v0 }
 0x387   : > { %2726 = vst.msk [vmem:[%s4346_s10 + $0x10] sm:$0xff] %vm2723_vm11, %v2599_v0  ;;  %v2601_v30 = vpop.permute.xlu1 %2600 }
 0x388   : > { %2694 = vst.msk [vmem:[%s4346_s10 + $0x18] sm:$0xff] %vm2690_vm10, %v2601_v30 }
 0x389   : > { %2727 = vst.msk [vmem:[%s4346_s10 + $0x18] sm:$0xff] %vm2723_vm11, %v2601_v30  ;;  %v2595_v6 = vpop.permute.xlu0 %2594 }
 0x38a   : > { %2691 = vst.msk [vmem:[%s4346_s10] sm:$0xff] %vm2690_vm10, %v2595_v6 }
 0x38b   : > { %2724 = vst.msk [vmem:[%s4346_s10] sm:$0xff] %vm2723_vm11, %v2595_v6  ;;  %v2597_v39 = vpop.permute.xlu1 %2596 }
 0x38c   : > { %2692 = vst.msk [vmem:[%s4346_s10 + $0x8] sm:$0xff] %vm2690_vm10, %v2597_v39 }
 0x38d   : > { %2725 = vst.msk [vmem:[%s4346_s10 + $0x8] sm:$0xff] %vm2723_vm11, %v2597_v39  ;;  %v2607_v57 = vpop.permute.xlu0 %2606 }
 0x38e   : > { %2697 = vst.msk [vmem:[%s4346_s10 + $0x30] sm:$0xff] %vm2690_vm10, %v2607_v57 }
 0x38f   : > { %2730 = vst.msk [vmem:[%s4346_s10 + $0x30] sm:$0xff] %vm2723_vm11, %v2607_v57  ;;  %v2609_v42 = vpop.permute.xlu1 %2608 }
 0x390   : > { %2698 = vst.msk [vmem:[%s4346_s10 + $0x38] sm:$0xff] %vm2690_vm10, %v2609_v42 }
 0x391   : > { %2731 = vst.msk [vmem:[%s4346_s10 + $0x38] sm:$0xff] %vm2723_vm11, %v2609_v42  ;;  %v2603_v24 = vpop.permute.xlu0 %2602 }
 0x392   : > { %2695 = vst.msk [vmem:[%s4346_s10 + $0x20] sm:$0xff] %vm2690_vm10, %v2603_v24 }
 0x393   : > { %2728 = vst.msk [vmem:[%s4346_s10 + $0x20] sm:$0xff] %vm2723_vm11, %v2603_v24  ;;  %v2605_v44 = vpop.permute.xlu1 %2604 }
 0x394   : > { %2696 = vst.msk [vmem:[%s4346_s10 + $0x28] sm:$0xff] %vm2690_vm10, %v2605_v44 }
 0x395   : > { %2729 = vst.msk [vmem:[%s4346_s10 + $0x28] sm:$0xff] %vm2723_vm11, %v2605_v44  ;;  %v2615_v31 = vpop.permute.xlu0 %2614 }
 0x396   : > { %2701 = vst.msk [vmem:[%s4346_s10 + $0x50] sm:$0xff] %vm2690_vm10, %v2615_v31 }
 0x397   : > { %2734 = vst.msk [vmem:[%s4346_s10 + $0x50] sm:$0xff] %vm2723_vm11, %v2615_v31  ;;  %v2617_v4 = vpop.permute.xlu1 %2616 }
 0x398   : > { %2702 = vst.msk [vmem:[%s4346_s10 + $0x58] sm:$0xff] %vm2690_vm10, %v2617_v4 }
 0x399   : > { %2735 = vst.msk [vmem:[%s4346_s10 + $0x58] sm:$0xff] %vm2723_vm11, %v2617_v4  ;;  %v2611_v55 = vpop.permute.xlu0 %2610 }
 0x39a   : > { %2699 = vst.msk [vmem:[%s4346_s10 + $0x40] sm:$0xff] %vm2690_vm10, %v2611_v55 }
 0x39b   : > { %2732 = vst.msk [vmem:[%s4346_s10 + $0x40] sm:$0xff] %vm2723_vm11, %v2611_v55  ;;  %v2613_v38 = vpop.permute.xlu1 %2612 }
 0x39c   : > { %2700 = vst.msk [vmem:[%s4346_s10 + $0x48] sm:$0xff] %vm2690_vm10, %v2613_v38 }
 0x39d   : > { %2733 = vst.msk [vmem:[%s4346_s10 + $0x48] sm:$0xff] %vm2723_vm11, %v2613_v38  ;;  %v2623_v33 = vpop.permute.xlu0 %2622 }
 0x39e   : > { %2705 = vst.msk [vmem:[%s4346_s10 + $0x70] sm:$0xff] %vm2690_vm10, %v2623_v33 }
 0x39f   : > { %2738 = vst.msk [vmem:[%s4346_s10 + $0x70] sm:$0xff] %vm2723_vm11, %v2623_v33  ;;  %v2625_v32 = vpop.permute.xlu1 %2624 }
 0x3a0   : > { %2706 = vst.msk [vmem:[%s4346_s10 + $0x78] sm:$0xff] %vm2690_vm10, %v2625_v32 }
 0x3a1   : > { %2739 = vst.msk [vmem:[%s4346_s10 + $0x78] sm:$0xff] %vm2723_vm11, %v2625_v32  ;;  %v2619_v27 = vpop.permute.xlu0 %2618 }
 0x3a2   : > { %2703 = vst.msk [vmem:[%s4346_s10 + $0x60] sm:$0xff] %vm2690_vm10, %v2619_v27 }
 0x3a3   : > { %2736 = vst.msk [vmem:[%s4346_s10 + $0x60] sm:$0xff] %vm2723_vm11, %v2619_v27  ;;  %v2621_v7 = vpop.permute.xlu1 %2620 }
 0x3a4   : > { %2704 = vst.msk [vmem:[%s4346_s10 + $0x68] sm:$0xff] %vm2690_vm10, %v2621_v7 }
 0x3a5   : > { %2737 = vst.msk [vmem:[%s4346_s10 + $0x68] sm:$0xff] %vm2723_vm11, %v2621_v7  ;;  %v2631_v11 = vpop.permute.xlu0 %2630 }
 0x3a6   : > { %2709 = vst.msk [vmem:[%s4346_s10 + $0x90] sm:$0xff] %vm2690_vm10, %v2631_v11 }
 0x3a7   : > { %2742 = vst.msk [vmem:[%s4346_s10 + $0x90] sm:$0xff] %vm2723_vm11, %v2631_v11  ;;  %v2633_v41 = vpop.permute.xlu1 %2632 }
 0x3a8   : > { %2710 = vst.msk [vmem:[%s4346_s10 + $0x98] sm:$0xff] %vm2690_vm10, %v2633_v41 }
 0x3a9   : > { %2743 = vst.msk [vmem:[%s4346_s10 + $0x98] sm:$0xff] %vm2723_vm11, %v2633_v41  ;;  %v2627_v10 = vpop.permute.xlu0 %2626 }
 0x3aa   : > { %2707 = vst.msk [vmem:[%s4346_s10 + $0x80] sm:$0xff] %vm2690_vm10, %v2627_v10 }
 0x3ab   : > { %2740 = vst.msk [vmem:[%s4346_s10 + $0x80] sm:$0xff] %vm2723_vm11, %v2627_v10  ;;  %v2629_v54 = vpop.permute.xlu1 %2628 }
 0x3ac   : > { %2708 = vst.msk [vmem:[%s4346_s10 + $0x88] sm:$0xff] %vm2690_vm10, %v2629_v54 }
 0x3ad   : > { %2741 = vst.msk [vmem:[%s4346_s10 + $0x88] sm:$0xff] %vm2723_vm11, %v2629_v54  ;;  %v2639_v61 = vpop.permute.xlu0 %2638 }
 0x3ae   : > { %2713 = vst.msk [vmem:[%s4346_s10 + $0xb0] sm:$0xff] %vm2690_vm10, %v2639_v61 }
 0x3af   : > { %2746 = vst.msk [vmem:[%s4346_s10 + $0xb0] sm:$0xff] %vm2723_vm11, %v2639_v61  ;;  %v2641_v53 = vpop.permute.xlu1 %2640 }
 0x3b0   : > { %2714 = vst.msk [vmem:[%s4346_s10 + $0xb8] sm:$0xff] %vm2690_vm10, %v2641_v53 }
 0x3b1   : > { %2747 = vst.msk [vmem:[%s4346_s10 + $0xb8] sm:$0xff] %vm2723_vm11, %v2641_v53  ;;  %v2635_v16 = vpop.permute.xlu0 %2634 }
 0x3b2   : > { %2711 = vst.msk [vmem:[%s4346_s10 + $0xa0] sm:$0xff] %vm2690_vm10, %v2635_v16 }
 0x3b3   : > { %2744 = vst.msk [vmem:[%s4346_s10 + $0xa0] sm:$0xff] %vm2723_vm11, %v2635_v16  ;;  %v2637_v17 = vpop.permute.xlu1 %2636 }
 0x3b4   : > { %2712 = vst.msk [vmem:[%s4346_s10 + $0xa8] sm:$0xff] %vm2690_vm10, %v2637_v17 }
 0x3b5   : > { %2745 = vst.msk [vmem:[%s4346_s10 + $0xa8] sm:$0xff] %vm2723_vm11, %v2637_v17  ;;  %v2647_v26 = vpop.permute.xlu0 %2646 }
 0x3b6   : > { %2717 = vst.msk [vmem:[%s4346_s10 + $0xd0] sm:$0xff] %vm2690_vm10, %v2647_v26 }
 0x3b7   : > { %2750 = vst.msk [vmem:[%s4346_s10 + $0xd0] sm:$0xff] %vm2723_vm11, %v2647_v26  ;;  %v2649_v19 = vpop.permute.xlu1 %2648 }
 0x3b8   : > { %2718 = vst.msk [vmem:[%s4346_s10 + $0xd8] sm:$0xff] %vm2690_vm10, %v2649_v19 }
 0x3b9   : > { %2751 = vst.msk [vmem:[%s4346_s10 + $0xd8] sm:$0xff] %vm2723_vm11, %v2649_v19  ;;  %v2643_v8 = vpop.permute.xlu0 %2642 }
 0x3ba   : > { %2715 = vst.msk [vmem:[%s4346_s10 + $0xc0] sm:$0xff] %vm2690_vm10, %v2643_v8 }
 0x3bb   : > { %2748 = vst.msk [vmem:[%s4346_s10 + $0xc0] sm:$0xff] %vm2723_vm11, %v2643_v8  ;;  %v2645_v52 = vpop.permute.xlu1 %2644 }
 0x3bc   : > { %2716 = vst.msk [vmem:[%s4346_s10 + $0xc8] sm:$0xff] %vm2690_vm10, %v2645_v52 }
 0x3bd   : > { %2749 = vst.msk [vmem:[%s4346_s10 + $0xc8] sm:$0xff] %vm2723_vm11, %v2645_v52 }
 0x3c1   : > { %v2651_v46 = vpop.permute.xlu0 %2650 }
 0x3c2   : > { %2719 = vst.msk [vmem:[%s4346_s10 + $0xe0] sm:$0xff] %vm2690_vm10, %v2651_v46 }
 0x3c3   : > { %2752 = vst.msk [vmem:[%s4346_s10 + $0xe0] sm:$0xff] %vm2723_vm11, %v2651_v46  ;;  %v2653_v21 = vpop.permute.xlu1 %2652 }
 0x3c4   : > { %2720 = vst.msk [vmem:[%s4346_s10 + $0xe8] sm:$0xff] %vm2690_vm10, %v2653_v21 }
 0x3c5   : > { %2753 = vst.msk [vmem:[%s4346_s10 + $0xe8] sm:$0xff] %vm2723_vm11, %v2653_v21  ;;  %v2655_v29 = vpop.permute.xlu0 %2654 }
 0x3c6   : > { %2721 = vst.msk [vmem:[%s4346_s10 + $0xf0] sm:$0xff] %vm2690_vm10, %v2655_v29 }
 0x3c7   : > { %2754 = vst.msk [vmem:[%s4346_s10 + $0xf0] sm:$0xff] %vm2723_vm11, %v2655_v29  ;;  %v2657_v18 = vpop.permute.xlu1 %2656 }
 0x3c8   : > { %2722 = vst.msk [vmem:[%s4346_s10 + $0xf8] sm:$0xff] %vm2690_vm10, %v2657_v18 }
 0x3c9   : > { %2755 = vst.msk [vmem:[%s4346_s10 + $0xf8] sm:$0xff] %vm2723_vm11, %v2657_v18 }
 0x3ca PF: > { %s16_s23 = sadd.s32 1, %s3389_s23   ;;  %s5206_s21 = smov %s3385_s22 }
 0x3cb   : > { %p13_p5 = scmp.ge.s32.totalorder %s16_s23, 4   ;;  %s5207_s22 = smov %s5209_s24 }
 0x3cd   :  { %15 = sbr.rel (!%p13_p5) target bundleno = 2 (0x2), region = 78 }

</bundles_post_ra>
